<compile_context>
chip_gen: v7x
topology: tpu7x:2x2x1
jax: 0.10.0
libtpu: 0.0.40
codegen_flags: <defaults>
</compile_context>

<pallas_src>
import numpy as np
import jax
import jax.numpy as jnp
from jax.experimental import pallas as pl
from jax.experimental.pallas import tpu as pltpu  # noqa: F401  (TPU backend assumed)

NEG_TRUE = 1.0    # nn.LeakyReLU(True)  -> negative_slope = 1.0 (identity)
NEG_DEF = 0.01    # nn.LeakyReLU()      -> negative_slope = 0.01

B, L, C = 2, 64, 14      # batch, frame_size, channel_num (14 matches (24+32)*14 fc input)
H = 40                   # hidden_size
F1, FP = 24, 32          # conv32 features / pooled conv3 features per channel
F = F1 + FP              # 56 features per channel


def _leaky(x, slope):
    if slope == 1.0:                      # LeakyReLU(True) is the identity
        return x
    return jnp.where(x >= 0, x, slope * x)


def _mxu(a, w):
    # bf16 MXU operands, f32 accumulation.
    return jnp.dot(a.astype(jnp.bfloat16), w, preferred_element_type=jnp.float32)


# ------------------------------ fused kernel --------------------------------

def fused_kernel(xs_ref, w0_ref, b0_ref, w2c_ref, b2c_ref, w3p_ref, b3p_ref,
                 w1r_ref, b1_ref, w2_ref, b2_ref, w3_ref, b3_ref,
                 w4_ref, b4_ref, w5_ref, b5_ref, o_ref):
    # --- feature extractor: 3 matmuls (pool selectors / permutation folded) --
    h0 = _mxu(xs_ref[...], w0_ref[...]) + b0_ref[...]              # (C*B, 536)
    x1 = _leaky(h0[:, 512:536], NEG_TRUE)                          # conv32 branch (C*B, 24)
    h1 = jnp.maximum(_leaky(h0[:, 0:256], NEG_TRUE),               # conv3 L1 + MaxPool2
                     _leaky(h0[:, 256:512], NEG_TRUE))             # (C*B, 256)

    g = _mxu(h1, w2c_ref[...]) + b2c_ref[...]                      # (C*B, 512)
    h2 = jnp.maximum(_leaky(g[:, 0:256], NEG_TRUE),                # conv3 L2 + MaxPool2
                     _leaky(g[:, 256:512], NEG_TRUE))              # (C*B, 256)

    hp = _leaky(_mxu(h2, w3p_ref[...]) + b3p_ref[...], NEG_TRUE)   # (C*B, 256) time-major
    m = jnp.maximum(hp[:, 0:128], hp[:, 128:256])                  # MaxPool1d(8,8) log-tree
    m = jnp.maximum(m[:, 0:64], m[:, 64:128])
    pooled = jnp.maximum(m[:, 0:32], m[:, 32:64])                  # (C*B, 32)

    feats = jnp.concatenate([x1, pooled], axis=1)                  # (C*B, 56), row = ch*B + b

    # --- fc heads (3 heads block-diagonalised).  First layer consumes feats in
    # its native channel-major row layout via the per-channel re-laid W1. -----
    parts = [_mxu(feats[ch * B:(ch + 1) * B, :], w1r_ref[ch]) for ch in range(C)]
    while len(parts) > 1:                                          # log-depth accumulation
        parts = [parts[i] + parts[i + 1] if i + 1 < len(parts) else parts[i]
                 for i in range(0, len(parts), 2)]
    z = _leaky(parts[0] + b1_ref[...], NEG_TRUE)                   # (B, 3H)
    z = _leaky(_mxu(z, w2_ref[...]) + b2_ref[...], NEG_DEF)        # (B, 12H)
    z = _leaky(_mxu(z, w3_ref[...]) + b3_ref[...], NEG_DEF)        # (B, 3H)
    z = _leaky(_mxu(z, w4_ref[...]) + b4_ref[...], NEG_DEF)        # (B, 3H/2)
    z = _mxu(z, w5_ref[...]) + b5_ref[...]                         # (B, 3)
    o_ref[...] = jax.nn.sigmoid(z)


# --------------------- operator matrices (init-time glue) -------------------

def build_conv32_matrix(w, b, L_in=64, K=32, S=16, OC=8):
    T = (L_in - K) // S + 1                                        # 3
    A = np.zeros((L_in, OC * T), np.float32)
    bf = np.zeros((OC * T,), np.float32)
    for o in range(OC):
        for t in range(T):
            A[S * t:S * t + K, o * T + t] = w[o, 0, :]
            bf[o * T + t] = b[o]
    return A, bf.reshape(1, -1)


def build_circ_conv_matrix(w, b, L_in):
    # Conv1d(k=3, stride=1, padding=1, padding_mode='circular') as dense matrix.
    OC, IC, K = w.shape
    M = np.zeros((IC * L_in, OC * L_in), np.float32)
    for co in range(OC):
        for ci in range(IC):
            for k in range(K):
                for t in range(L_in):
                    s = (t + k - 1) % L_in
                    M[ci * L_in + s, co * L_in + t] += w[co, ci, k]
    bf = np.repeat(np.asarray(b, np.float32), L_in).reshape(1, -1)
    return M, bf


def build_pool2_selectors(Cch, L_in):
    L_out = L_in // 2
    Se = np.zeros((Cch * L_in, Cch * L_out), np.float32)
    So = np.zeros((Cch * L_in, Cch * L_out), np.float32)
    for c in range(Cch):
        for t in range(L_out):
            Se[c * L_in + 2 * t, c * L_out + t] = 1.0
            So[c * L_in + 2 * t + 1, c * L_out + t] = 1.0
    return Se, So


def build_tmajor_perm(Cch, L_in):
    P = np.zeros((Cch * L_in, L_in * Cch), np.float32)
    for c in range(Cch):
        for t in range(L_in):
            P[c * L_in + t, t * Cch + c] = 1.0
    return P


def block_diag(mats):
    rows = sum(m.shape[0] for m in mats)
    cols = sum(m.shape[1] for m in mats)
    out = np.zeros((rows, cols), np.float32)
    r = c = 0
    for m in mats:
        out[r:r + m.shape[0], c:c + m.shape[1]] = m
        r += m.shape[0]
        c += m.shape[1]
    return out


def init_params(key):
    ks = iter(jax.random.split(key, 64))

    def rnd(shape, scale=0.1):
        return np.asarray(jax.random.normal(next(ks), shape, dtype=jnp.float32)) * np.float32(scale)

    # conv weights (PyTorch shapes (out_ch, in_ch, k))
    w32, b32 = rnd((8, 1, 32)), rnd((8,))
    wc1, bc1 = rnd((16, 1, 3)), rnd((16,))
    wc2, bc2 = rnd((32, 16, 3)), rnd((32,))
    wc3, bc3 = rnd((32, 32, 3)), rnd((32,))

    A32, b32f = build_conv32_matrix(w32, b32)                  # (64, 24)
    M1, b1f = build_circ_conv_matrix(wc1, bc1, 32)             # (32, 512)
    S1e, S1o = build_pool2_selectors(16, 32)
    M2, b2f = build_circ_conv_matrix(wc2, bc2, 16)             # (256, 512)
    S2e, S2o = build_pool2_selectors(32, 16)
    M3, b3f = build_circ_conv_matrix(wc3, bc3, 8)              # (256, 256)
    P = build_tmajor_perm(32, 8)                               # (256, 256)

    # fold MaxPool selectors / time-major permutation into the conv operators
    M1e, M1o = M1 @ S1e, M1 @ S1o                              # (32, 256)
    b1e, b1o = b1f @ S1e, b1f @ S1o
    M2e, M2o = M2 @ S2e, M2 @ S2o                              # (256, 256)
    b2e, b2o = b2f @ S2e, b2f @ S2o
    M3P, b3P = M3 @ P, b3f @ P                                 # (256, 256)

    # layer-0 combined operator on the full 64-sample window:
    #   lanes [0:256]=M1e, [256:512]=M1o (conv3 uses samples 32:), [512:536]=conv32
    M1e_p = np.zeros((64, 256), np.float32); M1e_p[32:, :] = M1e
    M1o_p = np.zeros((64, 256), np.float32); M1o_p[32:, :] = M1o
    W0 = np.hstack([M1e_p, M1o_p, A32])                        # (64, 536)
    b0 = np.hstack([b1e, b1o, b32f])                           # (1, 536)
    W2c = np.hstack([M2e, M2o])                                # (256, 512)
    b2c = np.hstack([b2e, b2o])                                # (1, 512)

    # three MLP heads (opr_swch / abnorm_evnt / emerg_evnt), block-diagonalised
    dims = [(F * C, H), (H, 4 * H), (4 * H, H), (H, H // 2), (H // 2, 1)]
    Ws = [[rnd(d, 0.05) for d in dims] for _ in range(3)]
    bs = [[rnd((1, d[1]), 0.05) for d in dims] for _ in range(3)]

    W1_bd = np.hstack([Ws[h][0] for h in range(3)])            # (784, 3H)
    b1_bd = np.hstack([bs[h][0] for h in range(3)])
    W2_bd = block_diag([Ws[h][1] for h in range(3)])           # (3H, 12H)
    b2_bd = np.hstack([bs[h][1] for h in range(3)])
    W3_bd = block_diag([Ws[h][2] for h in range(3)])           # (12H, 3H)
    b3_bd = np.hstack([bs[h][2] for h in range(3)])
    W4_bd = block_diag([Ws[h][3] for h in range(3)])           # (3H, 3H/2)
    b4_bd = np.hstack([bs[h][3] for h in range(3)])
    W5_bd = block_diag([Ws[h][4] for h in range(3)])           # (3H/2, 3)
    b5_bd = np.hstack([bs[h][4] for h in range(3)])

    # re-lay W1 so the kernel consumes feats in its native channel-major row
    # layout (absorbs the (B*C,56)->(B,784) transpose): W1r[ch,f,:] = W1_bd[f*C+ch,:]
    W1r = W1_bd.reshape(F, C, 3 * H).transpose(1, 0, 2)        # (C, 56, 3H)

    mats = dict(W0=W0, W2c=W2c, W3P=M3P, W1r=W1r,
                W2=W2_bd, W3=W3_bd, W4=W4_bd, W5=W5_bd)
    vecs = dict(b0=b0, b2c=b2c, b3P=b3P, b1m=b1_bd, b2m=b2_bd,
                b3m=b3_bd, b4m=b4_bd, b5m=b5_bd)
    p = {k: jnp.asarray(v, jnp.bfloat16) for k, v in mats.items()}      # MXU operands
    p.update({k: jnp.asarray(v, jnp.float32) for k, v in vecs.items()})  # biases in f32
    return p


# ------------------------------- wrapper -------------------------------------

@jax.jit
def conv_mlp_v2_forward(x, p):
    b, l, c = x.shape
    # one row per (channel, batch) pair, time on lanes
    xs = x.transpose(2, 0, 1).reshape(c * b, l)
    return pl.pallas_call(
        fused_kernel,
        out_shape=jax.ShapeDtypeStruct((b, 3), jnp.float32),
    )(xs, p["W0"], p["b0"], p["W2c"], p["b2c"], p["W3P"], p["b3P"],
      p["W1r"], p["b1m"], p["W2"], p["b2m"], p["W3"], p["b3m"],
      p["W4"], p["b4m"], p["W5"], p["b5m"])


if __name__ == "__main__":
    root = jax.random.PRNGKey(0)
    kx, kp = jax.random.split(root)
    x = jax.random.normal(kx, (B, L, C), dtype=jnp.float32)
    params = init_params(kp)

    out = jax.block_until_ready(conv_mlp_v2_forward(x, params))

    assert out.shape == (B, 3) and out.dtype == jnp.float32
    assert bool(jnp.all(jnp.isfinite(out)))
    assert bool(jnp.all((out >= 0.0) & (out <= 1.0)))   # sigmoid heads
    print("KERNEL_OK")
</pallas_src>

<mosaic_0001>
module attributes {stable_mosaic.version = 11 : i64} {
  func.func @fused_kernel(%arg0: memref<28x64xf32, #tpu.memory_space<vmem>>, %arg1: memref<64x536xbf16, #tpu.memory_space<vmem>>, %arg2: memref<1x536xf32, #tpu.memory_space<vmem>>, %arg3: memref<256x512xbf16, #tpu.memory_space<vmem>>, %arg4: memref<1x512xf32, #tpu.memory_space<vmem>>, %arg5: memref<256x256xbf16, #tpu.memory_space<vmem>>, %arg6: memref<1x256xf32, #tpu.memory_space<vmem>>, %arg7: memref<14x56x120xbf16, #tpu.memory_space<vmem>>, %arg8: memref<1x120xf32, #tpu.memory_space<vmem>>, %arg9: memref<120x480xbf16, #tpu.memory_space<vmem>>, %arg10: memref<1x480xf32, #tpu.memory_space<vmem>>, %arg11: memref<480x120xbf16, #tpu.memory_space<vmem>>, %arg12: memref<1x120xf32, #tpu.memory_space<vmem>>, %arg13: memref<120x60xbf16, #tpu.memory_space<vmem>>, %arg14: memref<1x60xf32, #tpu.memory_space<vmem>>, %arg15: memref<60x3xbf16, #tpu.memory_space<vmem>>, %arg16: memref<1x3xf32, #tpu.memory_space<vmem>>, %arg17: memref<2x3xf32, #tpu.memory_space<vmem>>) attributes {dimension_semantics = [], scalar_prefetch = 0 : i64, scratch_operands = 0 : i64, tpu.core_type = #tpu.core_type<tc>} {
    %c0 = arith.constant 0 : index
    %c0_0 = arith.constant 0 : index
    %0 = vector.load %arg0[%c0, %c0_0] : memref<28x64xf32, #tpu.memory_space<vmem>>, vector<28x64xf32>
    %c0_1 = arith.constant 0 : index
    %c0_2 = arith.constant 0 : index
    %1 = vector.load %arg1[%c0_1, %c0_2] : memref<64x536xbf16, #tpu.memory_space<vmem>>, vector<64x536xbf16>
    %2 = arith.truncf %0 : vector<28x64xf32> to vector<28x64xbf16>
    %cst = arith.constant dense<0.000000e+00> : vector<28x536xf32>
    %3 = tpu.matmul %2, %1, %cst {dimension_numbers = #tpu.dot_dimension_numbers<[1], [0], [0], [1], [0, 0, 1, 1], [], []>} : vector<28x64xbf16>, vector<64x536xbf16>, vector<28x536xf32> -> vector<28x536xf32>
    %c0_3 = arith.constant 0 : index
    %c0_4 = arith.constant 0 : index
    %4 = vector.load %arg2[%c0_3, %c0_4] : memref<1x536xf32, #tpu.memory_space<vmem>>, vector<1x536xf32>
    %5 = vector.broadcast %4 : vector<1x536xf32> to vector<28x536xf32>
    %6 = arith.addf %3, %5 : vector<28x536xf32>
    %7 = vector.extract_strided_slice %6 {offsets = [0, 512], sizes = [28, 24], strides = [1, 1]} : vector<28x536xf32> to vector<28x24xf32>
    %8 = vector.extract_strided_slice %6 {offsets = [0, 0], sizes = [28, 256], strides = [1, 1]} : vector<28x536xf32> to vector<28x256xf32>
    %9 = vector.extract_strided_slice %6 {offsets = [0, 256], sizes = [28, 256], strides = [1, 1]} : vector<28x536xf32> to vector<28x256xf32>
    %10 = arith.maximumf %8, %9 : vector<28x256xf32>
    %c0_5 = arith.constant 0 : index
    %c0_6 = arith.constant 0 : index
    %11 = vector.load %arg3[%c0_5, %c0_6] : memref<256x512xbf16, #tpu.memory_space<vmem>>, vector<256x512xbf16>
    %12 = arith.truncf %10 : vector<28x256xf32> to vector<28x256xbf16>
    %cst_7 = arith.constant dense<0.000000e+00> : vector<28x512xf32>
    %13 = tpu.matmul %12, %11, %cst_7 {dimension_numbers = #tpu.dot_dimension_numbers<[1], [0], [0], [1], [0, 0, 1, 1], [], []>} : vector<28x256xbf16>, vector<256x512xbf16>, vector<28x512xf32> -> vector<28x512xf32>
    %c0_8 = arith.constant 0 : index
    %c0_9 = arith.constant 0 : index
    %14 = vector.load %arg4[%c0_8, %c0_9] : memref<1x512xf32, #tpu.memory_space<vmem>>, vector<1x512xf32>
    %15 = vector.broadcast %14 : vector<1x512xf32> to vector<28x512xf32>
    %16 = arith.addf %13, %15 : vector<28x512xf32>
    %17 = vector.extract_strided_slice %16 {offsets = [0, 0], sizes = [28, 256], strides = [1, 1]} : vector<28x512xf32> to vector<28x256xf32>
    %18 = vector.extract_strided_slice %16 {offsets = [0, 256], sizes = [28, 256], strides = [1, 1]} : vector<28x512xf32> to vector<28x256xf32>
    %19 = arith.maximumf %17, %18 : vector<28x256xf32>
    %c0_10 = arith.constant 0 : index
    %c0_11 = arith.constant 0 : index
    %20 = vector.load %arg5[%c0_10, %c0_11] : memref<256x256xbf16, #tpu.memory_space<vmem>>, vector<256x256xbf16>
    %21 = arith.truncf %19 : vector<28x256xf32> to vector<28x256xbf16>
    %cst_12 = arith.constant dense<0.000000e+00> : vector<28x256xf32>
    %22 = tpu.matmul %21, %20, %cst_12 {dimension_numbers = #tpu.dot_dimension_numbers<[1], [0], [0], [1], [0, 0, 1, 1], [], []>} : vector<28x256xbf16>, vector<256x256xbf16>, vector<28x256xf32> -> vector<28x256xf32>
    %c0_13 = arith.constant 0 : index
    %c0_14 = arith.constant 0 : index
    %23 = vector.load %arg6[%c0_13, %c0_14] : memref<1x256xf32, #tpu.memory_space<vmem>>, vector<1x256xf32>
    %24 = vector.broadcast %23 : vector<1x256xf32> to vector<28x256xf32>
    %25 = arith.addf %22, %24 : vector<28x256xf32>
    %26 = vector.extract_strided_slice %25 {offsets = [0, 0], sizes = [28, 128], strides = [1, 1]} : vector<28x256xf32> to vector<28x128xf32>
    %27 = vector.extract_strided_slice %25 {offsets = [0, 128], sizes = [28, 128], strides = [1, 1]} : vector<28x256xf32> to vector<28x128xf32>
    %28 = arith.maximumf %26, %27 : vector<28x128xf32>
    %29 = vector.extract_strided_slice %28 {offsets = [0, 0], sizes = [28, 64], strides = [1, 1]} : vector<28x128xf32> to vector<28x64xf32>
    %30 = vector.extract_strided_slice %28 {offsets = [0, 64], sizes = [28, 64], strides = [1, 1]} : vector<28x128xf32> to vector<28x64xf32>
    %31 = arith.maximumf %29, %30 : vector<28x64xf32>
    %32 = vector.extract_strided_slice %31 {offsets = [0, 0], sizes = [28, 32], strides = [1, 1]} : vector<28x64xf32> to vector<28x32xf32>
    %33 = vector.extract_strided_slice %31 {offsets = [0, 32], sizes = [28, 32], strides = [1, 1]} : vector<28x64xf32> to vector<28x32xf32>
    %34 = arith.maximumf %32, %33 : vector<28x32xf32>
    %35 = tpu.concatenate %7, %34 in 1 : vector<28x24xf32>, vector<28x32xf32> -> vector<28x56xf32>
    %36 = vector.extract_strided_slice %35 {offsets = [0, 0], sizes = [2, 56], strides = [1, 1]} : vector<28x56xf32> to vector<2x56xf32>
    %c0_15 = arith.constant 0 : index
    %c0_16 = arith.constant 0 : index
    %c0_17 = arith.constant 0 : index
    %37 = vector.load %arg7[%c0_15, %c0_16, %c0_17] : memref<14x56x120xbf16, #tpu.memory_space<vmem>>, vector<1x56x120xbf16>
    %38 = vector.shape_cast %37 : vector<1x56x120xbf16> to vector<56x120xbf16>
    %39 = arith.truncf %36 : vector<2x56xf32> to vector<2x56xbf16>
    %cst_18 = arith.constant dense<0.000000e+00> : vector<2x120xf32>
    %40 = tpu.matmul %39, %38, %cst_18 {dimension_numbers = #tpu.dot_dimension_numbers<[1], [0], [0], [1], [0, 0, 1, 1], [], []>} : vector<2x56xbf16>, vector<56x120xbf16>, vector<2x120xf32> -> vector<2x120xf32>
    %41 = vector.extract_strided_slice %35 {offsets = [2, 0], sizes = [2, 56], strides = [1, 1]} : vector<28x56xf32> to vector<2x56xf32>
    %c1 = arith.constant 1 : index
    %c0_19 = arith.constant 0 : index
    %c0_20 = arith.constant 0 : index
    %42 = vector.load %arg7[%c1, %c0_19, %c0_20] : memref<14x56x120xbf16, #tpu.memory_space<vmem>>, vector<1x56x120xbf16>
    %43 = vector.shape_cast %42 : vector<1x56x120xbf16> to vector<56x120xbf16>
    %44 = arith.truncf %41 : vector<2x56xf32> to vector<2x56xbf16>
    %cst_21 = arith.constant dense<0.000000e+00> : vector<2x120xf32>
    %45 = tpu.matmul %44, %43, %cst_21 {dimension_numbers = #tpu.dot_dimension_numbers<[1], [0], [0], [1], [0, 0, 1, 1], [], []>} : vector<2x56xbf16>, vector<56x120xbf16>, vector<2x120xf32> -> vector<2x120xf32>
    %46 = vector.extract_strided_slice %35 {offsets = [4, 0], sizes = [2, 56], strides = [1, 1]} : vector<28x56xf32> to vector<2x56xf32>
    %c2 = arith.constant 2 : index
    %c0_22 = arith.constant 0 : index
    %c0_23 = arith.constant 0 : index
    %47 = vector.load %arg7[%c2, %c0_22, %c0_23] : memref<14x56x120xbf16, #tpu.memory_space<vmem>>, vector<1x56x120xbf16>
    %48 = vector.shape_cast %47 : vector<1x56x120xbf16> to vector<56x120xbf16>
    %49 = arith.truncf %46 : vector<2x56xf32> to vector<2x56xbf16>
    %cst_24 = arith.constant dense<0.000000e+00> : vector<2x120xf32>
    %50 = tpu.matmul %49, %48, %cst_24 {dimension_numbers = #tpu.dot_dimension_numbers<[1], [0], [0], [1], [0, 0, 1, 1], [], []>} : vector<2x56xbf16>, vector<56x120xbf16>, vector<2x120xf32> -> vector<2x120xf32>
    %51 = vector.extract_strided_slice %35 {offsets = [6, 0], sizes = [2, 56], strides = [1, 1]} : vector<28x56xf32> to vector<2x56xf32>
    %c3 = arith.constant 3 : index
    %c0_25 = arith.constant 0 : index
    %c0_26 = arith.constant 0 : index
    %52 = vector.load %arg7[%c3, %c0_25, %c0_26] : memref<14x56x120xbf16, #tpu.memory_space<vmem>>, vector<1x56x120xbf16>
    %53 = vector.shape_cast %52 : vector<1x56x120xbf16> to vector<56x120xbf16>
    %54 = arith.truncf %51 : vector<2x56xf32> to vector<2x56xbf16>
    %cst_27 = arith.constant dense<0.000000e+00> : vector<2x120xf32>
    %55 = tpu.matmul %54, %53, %cst_27 {dimension_numbers = #tpu.dot_dimension_numbers<[1], [0], [0], [1], [0, 0, 1, 1], [], []>} : vector<2x56xbf16>, vector<56x120xbf16>, vector<2x120xf32> -> vector<2x120xf32>
    %56 = vector.extract_strided_slice %35 {offsets = [8, 0], sizes = [2, 56], strides = [1, 1]} : vector<28x56xf32> to vector<2x56xf32>
    %c4 = arith.constant 4 : index
    %c0_28 = arith.constant 0 : index
    %c0_29 = arith.constant 0 : index
    %57 = vector.load %arg7[%c4, %c0_28, %c0_29] : memref<14x56x120xbf16, #tpu.memory_space<vmem>>, vector<1x56x120xbf16>
    %58 = vector.shape_cast %57 : vector<1x56x120xbf16> to vector<56x120xbf16>
    %59 = arith.truncf %56 : vector<2x56xf32> to vector<2x56xbf16>
    %cst_30 = arith.constant dense<0.000000e+00> : vector<2x120xf32>
    %60 = tpu.matmul %59, %58, %cst_30 {dimension_numbers = #tpu.dot_dimension_numbers<[1], [0], [0], [1], [0, 0, 1, 1], [], []>} : vector<2x56xbf16>, vector<56x120xbf16>, vector<2x120xf32> -> vector<2x120xf32>
    %61 = vector.extract_strided_slice %35 {offsets = [10, 0], sizes = [2, 56], strides = [1, 1]} : vector<28x56xf32> to vector<2x56xf32>
    %c5 = arith.constant 5 : index
    %c0_31 = arith.constant 0 : index
    %c0_32 = arith.constant 0 : index
    %62 = vector.load %arg7[%c5, %c0_31, %c0_32] : memref<14x56x120xbf16, #tpu.memory_space<vmem>>, vector<1x56x120xbf16>
    %63 = vector.shape_cast %62 : vector<1x56x120xbf16> to vector<56x120xbf16>
    %64 = arith.truncf %61 : vector<2x56xf32> to vector<2x56xbf16>
    %cst_33 = arith.constant dense<0.000000e+00> : vector<2x120xf32>
    %65 = tpu.matmul %64, %63, %cst_33 {dimension_numbers = #tpu.dot_dimension_numbers<[1], [0], [0], [1], [0, 0, 1, 1], [], []>} : vector<2x56xbf16>, vector<56x120xbf16>, vector<2x120xf32> -> vector<2x120xf32>
    %66 = vector.extract_strided_slice %35 {offsets = [12, 0], sizes = [2, 56], strides = [1, 1]} : vector<28x56xf32> to vector<2x56xf32>
    %c6 = arith.constant 6 : index
    %c0_34 = arith.constant 0 : index
    %c0_35 = arith.constant 0 : index
    %67 = vector.load %arg7[%c6, %c0_34, %c0_35] : memref<14x56x120xbf16, #tpu.memory_space<vmem>>, vector<1x56x120xbf16>
    %68 = vector.shape_cast %67 : vector<1x56x120xbf16> to vector<56x120xbf16>
    %69 = arith.truncf %66 : vector<2x56xf32> to vector<2x56xbf16>
    %cst_36 = arith.constant dense<0.000000e+00> : vector<2x120xf32>
    %70 = tpu.matmul %69, %68, %cst_36 {dimension_numbers = #tpu.dot_dimension_numbers<[1], [0], [0], [1], [0, 0, 1, 1], [], []>} : vector<2x56xbf16>, vector<56x120xbf16>, vector<2x120xf32> -> vector<2x120xf32>
    %71 = vector.extract_strided_slice %35 {offsets = [14, 0], sizes = [2, 56], strides = [1, 1]} : vector<28x56xf32> to vector<2x56xf32>
    %c7 = arith.constant 7 : index
    %c0_37 = arith.constant 0 : index
    %c0_38 = arith.constant 0 : index
    %72 = vector.load %arg7[%c7, %c0_37, %c0_38] : memref<14x56x120xbf16, #tpu.memory_space<vmem>>, vector<1x56x120xbf16>
    %73 = vector.shape_cast %72 : vector<1x56x120xbf16> to vector<56x120xbf16>
    %74 = arith.truncf %71 : vector<2x56xf32> to vector<2x56xbf16>
    %cst_39 = arith.constant dense<0.000000e+00> : vector<2x120xf32>
    %75 = tpu.matmul %74, %73, %cst_39 {dimension_numbers = #tpu.dot_dimension_numbers<[1], [0], [0], [1], [0, 0, 1, 1], [], []>} : vector<2x56xbf16>, vector<56x120xbf16>, vector<2x120xf32> -> vector<2x120xf32>
    %76 = vector.extract_strided_slice %35 {offsets = [16, 0], sizes = [2, 56], strides = [1, 1]} : vector<28x56xf32> to vector<2x56xf32>
    %c8 = arith.constant 8 : index
    %c0_40 = arith.constant 0 : index
    %c0_41 = arith.constant 0 : index
    %77 = vector.load %arg7[%c8, %c0_40, %c0_41] : memref<14x56x120xbf16, #tpu.memory_space<vmem>>, vector<1x56x120xbf16>
    %78 = vector.shape_cast %77 : vector<1x56x120xbf16> to vector<56x120xbf16>
    %79 = arith.truncf %76 : vector<2x56xf32> to vector<2x56xbf16>
    %cst_42 = arith.constant dense<0.000000e+00> : vector<2x120xf32>
    %80 = tpu.matmul %79, %78, %cst_42 {dimension_numbers = #tpu.dot_dimension_numbers<[1], [0], [0], [1], [0, 0, 1, 1], [], []>} : vector<2x56xbf16>, vector<56x120xbf16>, vector<2x120xf32> -> vector<2x120xf32>
    %81 = vector.extract_strided_slice %35 {offsets = [18, 0], sizes = [2, 56], strides = [1, 1]} : vector<28x56xf32> to vector<2x56xf32>
    %c9 = arith.constant 9 : index
    %c0_43 = arith.constant 0 : index
    %c0_44 = arith.constant 0 : index
    %82 = vector.load %arg7[%c9, %c0_43, %c0_44] : memref<14x56x120xbf16, #tpu.memory_space<vmem>>, vector<1x56x120xbf16>
    %83 = vector.shape_cast %82 : vector<1x56x120xbf16> to vector<56x120xbf16>
    %84 = arith.truncf %81 : vector<2x56xf32> to vector<2x56xbf16>
    %cst_45 = arith.constant dense<0.000000e+00> : vector<2x120xf32>
    %85 = tpu.matmul %84, %83, %cst_45 {dimension_numbers = #tpu.dot_dimension_numbers<[1], [0], [0], [1], [0, 0, 1, 1], [], []>} : vector<2x56xbf16>, vector<56x120xbf16>, vector<2x120xf32> -> vector<2x120xf32>
    %86 = vector.extract_strided_slice %35 {offsets = [20, 0], sizes = [2, 56], strides = [1, 1]} : vector<28x56xf32> to vector<2x56xf32>
    %c10 = arith.constant 10 : index
    %c0_46 = arith.constant 0 : index
    %c0_47 = arith.constant 0 : index
    %87 = vector.load %arg7[%c10, %c0_46, %c0_47] : memref<14x56x120xbf16, #tpu.memory_space<vmem>>, vector<1x56x120xbf16>
    %88 = vector.shape_cast %87 : vector<1x56x120xbf16> to vector<56x120xbf16>
    %89 = arith.truncf %86 : vector<2x56xf32> to vector<2x56xbf16>
    %cst_48 = arith.constant dense<0.000000e+00> : vector<2x120xf32>
    %90 = tpu.matmul %89, %88, %cst_48 {dimension_numbers = #tpu.dot_dimension_numbers<[1], [0], [0], [1], [0, 0, 1, 1], [], []>} : vector<2x56xbf16>, vector<56x120xbf16>, vector<2x120xf32> -> vector<2x120xf32>
    %91 = vector.extract_strided_slice %35 {offsets = [22, 0], sizes = [2, 56], strides = [1, 1]} : vector<28x56xf32> to vector<2x56xf32>
    %c11 = arith.constant 11 : index
    %c0_49 = arith.constant 0 : index
    %c0_50 = arith.constant 0 : index
    %92 = vector.load %arg7[%c11, %c0_49, %c0_50] : memref<14x56x120xbf16, #tpu.memory_space<vmem>>, vector<1x56x120xbf16>
    %93 = vector.shape_cast %92 : vector<1x56x120xbf16> to vector<56x120xbf16>
    %94 = arith.truncf %91 : vector<2x56xf32> to vector<2x56xbf16>
    %cst_51 = arith.constant dense<0.000000e+00> : vector<2x120xf32>
    %95 = tpu.matmul %94, %93, %cst_51 {dimension_numbers = #tpu.dot_dimension_numbers<[1], [0], [0], [1], [0, 0, 1, 1], [], []>} : vector<2x56xbf16>, vector<56x120xbf16>, vector<2x120xf32> -> vector<2x120xf32>
    %96 = vector.extract_strided_slice %35 {offsets = [24, 0], sizes = [2, 56], strides = [1, 1]} : vector<28x56xf32> to vector<2x56xf32>
    %c12 = arith.constant 12 : index
    %c0_52 = arith.constant 0 : index
    %c0_53 = arith.constant 0 : index
    %97 = vector.load %arg7[%c12, %c0_52, %c0_53] : memref<14x56x120xbf16, #tpu.memory_space<vmem>>, vector<1x56x120xbf16>
    %98 = vector.shape_cast %97 : vector<1x56x120xbf16> to vector<56x120xbf16>
    %99 = arith.truncf %96 : vector<2x56xf32> to vector<2x56xbf16>
    %cst_54 = arith.constant dense<0.000000e+00> : vector<2x120xf32>
    %100 = tpu.matmul %99, %98, %cst_54 {dimension_numbers = #tpu.dot_dimension_numbers<[1], [0], [0], [1], [0, 0, 1, 1], [], []>} : vector<2x56xbf16>, vector<56x120xbf16>, vector<2x120xf32> -> vector<2x120xf32>
    %101 = vector.extract_strided_slice %35 {offsets = [26, 0], sizes = [2, 56], strides = [1, 1]} : vector<28x56xf32> to vector<2x56xf32>
    %c13 = arith.constant 13 : index
    %c0_55 = arith.constant 0 : index
    %c0_56 = arith.constant 0 : index
    %102 = vector.load %arg7[%c13, %c0_55, %c0_56] : memref<14x56x120xbf16, #tpu.memory_space<vmem>>, vector<1x56x120xbf16>
    %103 = vector.shape_cast %102 : vector<1x56x120xbf16> to vector<56x120xbf16>
    %104 = arith.truncf %101 : vector<2x56xf32> to vector<2x56xbf16>
    %cst_57 = arith.constant dense<0.000000e+00> : vector<2x120xf32>
    %105 = tpu.matmul %104, %103, %cst_57 {dimension_numbers = #tpu.dot_dimension_numbers<[1], [0], [0], [1], [0, 0, 1, 1], [], []>} : vector<2x56xbf16>, vector<56x120xbf16>, vector<2x120xf32> -> vector<2x120xf32>
    %106 = arith.addf %40, %45 : vector<2x120xf32>
    %107 = arith.addf %50, %55 : vector<2x120xf32>
    %108 = arith.addf %60, %65 : vector<2x120xf32>
    %109 = arith.addf %70, %75 : vector<2x120xf32>
    %110 = arith.addf %80, %85 : vector<2x120xf32>
    %111 = arith.addf %90, %95 : vector<2x120xf32>
    %112 = arith.addf %100, %105 : vector<2x120xf32>
    %113 = arith.addf %106, %107 : vector<2x120xf32>
    %114 = arith.addf %108, %109 : vector<2x120xf32>
    %115 = arith.addf %110, %111 : vector<2x120xf32>
    %116 = arith.addf %113, %114 : vector<2x120xf32>
    %117 = arith.addf %115, %112 : vector<2x120xf32>
    %118 = arith.addf %116, %117 : vector<2x120xf32>
    %c0_58 = arith.constant 0 : index
    %c0_59 = arith.constant 0 : index
    %119 = vector.load %arg8[%c0_58, %c0_59] : memref<1x120xf32, #tpu.memory_space<vmem>>, vector<1x120xf32>
    %120 = vector.broadcast %119 : vector<1x120xf32> to vector<2x120xf32>
    %121 = arith.addf %118, %120 : vector<2x120xf32>
    %c0_60 = arith.constant 0 : index
    %c0_61 = arith.constant 0 : index
    %122 = vector.load %arg9[%c0_60, %c0_61] : memref<120x480xbf16, #tpu.memory_space<vmem>>, vector<120x480xbf16>
    %123 = arith.truncf %121 : vector<2x120xf32> to vector<2x120xbf16>
    %cst_62 = arith.constant dense<0.000000e+00> : vector<2x480xf32>
    %124 = tpu.matmul %123, %122, %cst_62 {dimension_numbers = #tpu.dot_dimension_numbers<[1], [0], [0], [1], [0, 0, 1, 1], [], []>} : vector<2x120xbf16>, vector<120x480xbf16>, vector<2x480xf32> -> vector<2x480xf32>
    %c0_63 = arith.constant 0 : index
    %c0_64 = arith.constant 0 : index
    %125 = vector.load %arg10[%c0_63, %c0_64] : memref<1x480xf32, #tpu.memory_space<vmem>>, vector<1x480xf32>
    %126 = vector.broadcast %125 : vector<1x480xf32> to vector<2x480xf32>
    %127 = arith.addf %124, %126 : vector<2x480xf32>
    %cst_65 = arith.constant 0.000000e+00 : f32
    %128 = vector.broadcast %cst_65 : f32 to vector<2x480xf32>
    %129 = arith.cmpf oge, %127, %128 : vector<2x480xf32>
    %cst_66 = arith.constant 0.00999999977 : f32
    %130 = vector.broadcast %cst_66 : f32 to vector<2x480xf32>
    %131 = arith.mulf %130, %127 : vector<2x480xf32>
    %132 = arith.select %129, %127, %131 : vector<2x480xi1>, vector<2x480xf32>
    %c0_67 = arith.constant 0 : index
    %c0_68 = arith.constant 0 : index
    %133 = vector.load %arg11[%c0_67, %c0_68] : memref<480x120xbf16, #tpu.memory_space<vmem>>, vector<480x120xbf16>
    %134 = arith.truncf %132 : vector<2x480xf32> to vector<2x480xbf16>
    %cst_69 = arith.constant dense<0.000000e+00> : vector<2x120xf32>
    %135 = tpu.matmul %134, %133, %cst_69 {dimension_numbers = #tpu.dot_dimension_numbers<[1], [0], [0], [1], [0, 0, 1, 1], [], []>} : vector<2x480xbf16>, vector<480x120xbf16>, vector<2x120xf32> -> vector<2x120xf32>
    %c0_70 = arith.constant 0 : index
    %c0_71 = arith.constant 0 : index
    %136 = vector.load %arg12[%c0_70, %c0_71] : memref<1x120xf32, #tpu.memory_space<vmem>>, vector<1x120xf32>
    %137 = vector.broadcast %136 : vector<1x120xf32> to vector<2x120xf32>
    %138 = arith.addf %135, %137 : vector<2x120xf32>
    %cst_72 = arith.constant 0.000000e+00 : f32
    %139 = vector.broadcast %cst_72 : f32 to vector<2x120xf32>
    %140 = arith.cmpf oge, %138, %139 : vector<2x120xf32>
    %cst_73 = arith.constant 0.00999999977 : f32
    %141 = vector.broadcast %cst_73 : f32 to vector<2x120xf32>
    %142 = arith.mulf %141, %138 : vector<2x120xf32>
    %143 = arith.select %140, %138, %142 : vector<2x120xi1>, vector<2x120xf32>
    %c0_74 = arith.constant 0 : index
    %c0_75 = arith.constant 0 : index
    %144 = vector.load %arg13[%c0_74, %c0_75] : memref<120x60xbf16, #tpu.memory_space<vmem>>, vector<120x60xbf16>
    %145 = arith.truncf %143 : vector<2x120xf32> to vector<2x120xbf16>
    %cst_76 = arith.constant dense<0.000000e+00> : vector<2x60xf32>
    %146 = tpu.matmul %145, %144, %cst_76 {dimension_numbers = #tpu.dot_dimension_numbers<[1], [0], [0], [1], [0, 0, 1, 1], [], []>} : vector<2x120xbf16>, vector<120x60xbf16>, vector<2x60xf32> -> vector<2x60xf32>
    %c0_77 = arith.constant 0 : index
    %c0_78 = arith.constant 0 : index
    %147 = vector.load %arg14[%c0_77, %c0_78] : memref<1x60xf32, #tpu.memory_space<vmem>>, vector<1x60xf32>
    %148 = vector.broadcast %147 : vector<1x60xf32> to vector<2x60xf32>
    %149 = arith.addf %146, %148 : vector<2x60xf32>
    %cst_79 = arith.constant 0.000000e+00 : f32
    %150 = vector.broadcast %cst_79 : f32 to vector<2x60xf32>
    %151 = arith.cmpf oge, %149, %150 : vector<2x60xf32>
    %cst_80 = arith.constant 0.00999999977 : f32
    %152 = vector.broadcast %cst_80 : f32 to vector<2x60xf32>
    %153 = arith.mulf %152, %149 : vector<2x60xf32>
    %154 = arith.select %151, %149, %153 : vector<2x60xi1>, vector<2x60xf32>
    %c0_81 = arith.constant 0 : index
    %c0_82 = arith.constant 0 : index
    %155 = vector.load %arg15[%c0_81, %c0_82] : memref<60x3xbf16, #tpu.memory_space<vmem>>, vector<60x3xbf16>
    %156 = arith.truncf %154 : vector<2x60xf32> to vector<2x60xbf16>
    %cst_83 = arith.constant dense<0.000000e+00> : vector<2x3xf32>
    %157 = tpu.matmul %156, %155, %cst_83 {dimension_numbers = #tpu.dot_dimension_numbers<[1], [0], [0], [1], [0, 0, 1, 1], [], []>} : vector<2x60xbf16>, vector<60x3xbf16>, vector<2x3xf32> -> vector<2x3xf32>
    %c0_84 = arith.constant 0 : index
    %c0_85 = arith.constant 0 : index
    %158 = vector.load %arg16[%c0_84, %c0_85] : memref<1x3xf32, #tpu.memory_space<vmem>>, vector<1x3xf32>
    %159 = vector.broadcast %158 : vector<1x3xf32> to vector<2x3xf32>
    %160 = arith.addf %157, %159 : vector<2x3xf32>
    %161 = arith.negf %160 : vector<2x3xf32>
    %162 = math.exp %161 : vector<2x3xf32>
    %cst_86 = arith.constant 1.000000e+00 : f32
    %163 = vector.broadcast %cst_86 : f32 to vector<2x3xf32>
    %164 = arith.addf %163, %162 : vector<2x3xf32>
    %165 = arith.divf %163, %164 : vector<2x3xf32>
    %c0_87 = arith.constant 0 : index
    %c0_88 = arith.constant 0 : index
    %166 = vector.load %arg17[%c0_87, %c0_88] : memref<2x3xf32, #tpu.memory_space<vmem>>, vector<2x3xf32>
    tpu.vector_store %arg17[%c0_87, %c0_88], %165 {strides = array<i32>} : memref<2x3xf32, #tpu.memory_space<vmem>>, vector<2x3xf32>,
    return
  }
}

</mosaic_0001>

<bundles_post_ra>
// kernel: conv_mlp_v2_forward.1
= control target key start
LH: loop header
LB: loop body
LE: loop exit
PB: predicated region body
PF: predicated region fallthrough
CT: control target
= control target key end

     0   :  { %s4919_s0 = inlined_call_operand.vmem [shape: f32[28,64], index: 0, kind: input, shape index: {}]   ;;  %s4920_s1 = inlined_call_operand.vmem [shape: bf16[64,536], index: 1, kind: input, shape index: {}]   ;;  %s4921_s2 = inlined_call_operand.vmem [shape: f32[1,536], index: 2, kind: input, shape index: {}]   ;;  %s4922_s3 = inlined_call_operand.hbm [shape: bf16[256,512], index: 3, kind: input, shape index: {}]   ;;  %s4923_s4 = inlined_call_operand.vmem [shape: f32[1,512], index: 4, kind: input, shape index: {}]   ;;  %s4924_s5 = inlined_call_operand.hbm [shape: bf16[256,256], index: 5, kind: input, shape index: {}]   ;;  %s4925_s6 = inlined_call_operand.vmem [shape: f32[1,256], index: 6, kind: input, shape index: {}]   ;;  %s4926_s7 = inlined_call_operand.hbm [shape: bf16[14,56,120], index: 7, kind: input, shape index: {}]   ;;  %s4927_s8 = inlined_call_operand.vmem [shape: f32[1,120], index: 8, kind: input, shape index: {}]   ;;  %s4928_s9 = inlined_call_operand.hbm [shape: bf16[120,480], index: 9, kind: input, shape index: {}]   ;;  %s4929_s10 = inlined_call_operand.vmem [shape: f32[1,480], index: 10, kind: input, shape index: {}]   ;;  %s4930_s11 = inlined_call_operand.hbm [shape: bf16[480,120], index: 11, kind: input, shape index: {}]   ;;  %s4931_s12 = inlined_call_operand.vmem [shape: f32[1,120], index: 12, kind: input, shape index: {}]   ;;  %s4932_s13 = inlined_call_operand.vmem [shape: bf16[120,60], index: 13, kind: input, shape index: {}]   ;;  %s4933_s14 = inlined_call_operand.vmem [shape: f32[1,60], index: 14, kind: input, shape index: {}]   ;;  %s4934_s15 = inlined_call_operand.vmem [shape: bf16[60,3], index: 15, kind: input, shape index: {}]   ;;  %s4935_s16 = inlined_call_operand.vmem [shape: f32[1,3], index: 16, kind: input, shape index: {}]   ;;  %s4936_s17 = inlined_call_operand.hbm [shape: f32[2,3], index: 17, kind: output, shape index: {}]  }
   0x1   :  { %4940 = sst [smem:[#allocation16_spill]] %s4919_s0 }
   0x2   :  { %4941 = sst [smem:[#allocation17_spill]] %s4920_s1 }
   0x3   :  { %4942 = sst [smem:[#allocation18_spill]] %s4936_s17 }
   0x4   :  { %22 = vsyncpa [#allocation3], 0 }
   0x5   :  { %23 = vsyncpa [#allocation6], 0 }
   0x6   :  { %24 = vsyncpa [#allocation9], 0 }
   0x7   :  { %25 = vsyncpa [#allocation4], 0  ;;  %s4349_s24 = smov [#allocation5]   ;;  %s4209_s28 = scalar_lea.hbm %s4924_s5, 4096 }
   0x8   :  { %s51_s25 = sshll.u32 %s4349_s24, 4  ;;  %p4210_p0 = scmp.ne.s32.totalorder %s4924_s5, %s4209_s28  ;;  %s52_s25 = int_to_ptr.vmem [resolvable:$true] %s51_s25 }
   0x9   :  { %p4213_p1 = scmp.lt.u32.totalorder %s4209_s28, %s4924_s5 }
   0xb   :  { %p4215_p2 = pnand %p4213_p1, %p4210_p0 }
   0xd   :  { %4218 = shalt.err (!%p4215_p2)
}
   0xe   :  { %s4219_s19 = scalar_lea.vmem %s52_s25, 4096  ;;  %p4224_p4 = scmp.lt.s32.totalorder %s52_s25, %s52_s25 }
   0xf   :  { %p4220_p3 = scmp.ne.s32.totalorder %s52_s25, %s4219_s19  ;;  %p4225_p5 = scmp.lt.s32.totalorder %s4219_s19, %s4219_s19 }
  0x11   :  { %p4226_p6 = por %p4225_p5, %p4224_p4 }
  0x13   :  { %p4227_p7 = pnand %p4226_p6, %p4220_p3 }
  0x15   :  { %4230 = shalt.err (!%p4227_p7)
}
  0x16   :  { %s4350_s1 = smov 128   ;;  %s4351_s20 = smov 8  }
  0x17   :  { %57 = dma.hbm_to_vmem [thread:$0]  %s4924_s5, 4096, %s52_s25, [#allocation6], %s4350_s1, %s4350_s1, %s4351_s20  }
  0x18   :  { %s4352_s23 = smov [#allocation8]   ;;  %s4353_s26 = smov [#allocation2]  }
  0x19   :  { %s79_s24 = sshll.u32 %s4352_s23, 4  ;;  %s37_s27 = sshll.u32 %s4353_s26, 4  ;;  %s80_s24 = int_to_ptr.vmem [resolvable:$true] %s79_s24  ;;  %s38_s27 = int_to_ptr.vmem [resolvable:$true] %s37_s27 }
  0x1a   :  { %s4231_s0 = scalar_lea.hbm %s4928_s9, 3840 }
  0x1b   :  { %p4232_p8 = scmp.ne.s32.totalorder %s4928_s9, %s4231_s0  ;;  %p4235_p9 = scmp.lt.u32.totalorder %s4231_s0, %s4928_s9 }
  0x1d   :  { %p4237_p10 = pnand %p4235_p9, %p4232_p8 }
  0x1f   :  { %4240 = shalt.err (!%p4237_p10)
}
  0x20   :  { %s4241_s5 = scalar_lea.vmem %s80_s24, 3840  ;;  %p4246_p12 = scmp.lt.s32.totalorder %s80_s24, %s80_s24 }
  0x21   :  { %p4242_p11 = scmp.ne.s32.totalorder %s80_s24, %s4241_s5  ;;  %p4247_p13 = scmp.lt.s32.totalorder %s4241_s5, %s4241_s5 }
  0x23   :  { %p4248_p0 = por %p4247_p13, %p4246_p12 }
  0x25   :  { %p4249_p1 = pnand %p4248_p0, %p4242_p11 }
  0x27   :  { %4252 = shalt.err (!%p4249_p1)
}
  0x28   :  { %s4354_s25 = smov 256   ;;  %s4355_s1 = smov 16  }
  0x29   :  { %85 = dma.hbm_to_vmem [thread:$0]  %s4928_s9, 3840, %s80_s24, [#allocation9], %s4354_s25, %s4354_s25, %s4355_s1  }
  0x2a   :  { %s4253_s17 = scalar_lea.hbm %s4922_s3, 8192 }
  0x2b   :  { %p4254_p2 = scmp.ne.s32.totalorder %s4922_s3, %s4253_s17  ;;  %p4257_p3 = scmp.lt.u32.totalorder %s4253_s17, %s4922_s3 }
  0x2d   :  { %p4259_p4 = pnand %p4257_p3, %p4254_p2 }
  0x2f   :  { %4262 = shalt.err (!%p4259_p4)
}
  0x30   :  { %s4263_s30 = scalar_lea.vmem %s38_s27, 8192  ;;  %p4268_p6 = scmp.lt.s32.totalorder %s38_s27, %s38_s27 }
  0x31   :  { %p4264_p5 = scmp.ne.s32.totalorder %s38_s27, %s4263_s30  ;;  %p4269_p7 = scmp.lt.s32.totalorder %s4263_s30, %s4263_s30 }
  0x33   :  { %p4270_p8 = por %p4269_p7, %p4268_p6 }
  0x35   :  { %p4271_p9 = pnand %p4270_p8, %p4264_p5 }
  0x37   :  { %4274 = shalt.err (!%p4271_p9)
}
  0x38   :  { %43 = dma.hbm_to_vmem [thread:$0]  %s4922_s3, 8192, %s38_s27, [#allocation3], %s4354_s25, %s4354_s25, %s4355_s1  }
  0x39   :  { %s4356_s18 = smov [#allocation7]   ;;  %s4275_s21 = scalar_lea.hbm %s4926_s7, 6272 }
  0x3a   :  { %s65_s19 = sshll.u32 %s4356_s18, 4  ;;  %p4276_p10 = scmp.ne.s32.totalorder %s4926_s7, %s4275_s21  ;;  %s66_s19 = int_to_ptr.vmem [resolvable:$true] %s65_s19 }
  0x3b   :  { %p4279_p11 = scmp.lt.u32.totalorder %s4275_s21, %s4926_s7 }
  0x3d   :  { %p4281_p12 = pnand %p4279_p11, %p4276_p10 }
  0x3f   :  { %4284 = shalt.err (!%p4281_p12)
}
  0x40   :  { %s4285_s28 = scalar_lea.vmem %s66_s19, 6272  ;;  %p4290_p0 = scmp.lt.s32.totalorder %s66_s19, %s66_s19 }
  0x41   :  { %p4286_p13 = scmp.ne.s32.totalorder %s66_s19, %s4285_s28  ;;  %p4291_p1 = scmp.lt.s32.totalorder %s4285_s28, %s4285_s28 }
  0x43   :  { %p4292_p2 = por %p4291_p1, %p4290_p0 }
  0x45   :  { %p4293_p3 = pnand %p4292_p2, %p4286_p13 }
  0x47   :  { %4296 = shalt.err (!%p4293_p3)
}
  0x48   :  { %s4357_s3 = smov 64   ;;  %s4358_s27 = smov 4  }
  0x49   :  { %71 = dma.hbm_to_vmem [thread:$0]  %s4926_s7, 6272, %s66_s19, [#allocation6], %s4357_s3, %s4357_s3, %s4358_s27  }
  0x4a   :  { %s4359_s29 = smov [#allocation10]   ;;  %s4297_s24 = scalar_lea.hbm %s4930_s11, 3840 }
  0x4b   :  { %s93_s0 = sshll.u32 %s4359_s29, 4  ;;  %p4298_p4 = scmp.ne.s32.totalorder %s4930_s11, %s4297_s24  ;;  %s94_s0 = int_to_ptr.vmem [resolvable:$true] %s93_s0 }
  0x4c   :  { %p4301_p5 = scmp.lt.u32.totalorder %s4297_s24, %s4930_s11 }
  0x4e   :  { %p4303_p6 = pnand %p4301_p5, %p4298_p4 }
  0x50   :  { %4306 = shalt.err (!%p4303_p6)
}
  0x51   :  { %s4307_s22 = scalar_lea.vmem %s94_s0, 3840  ;;  %p4312_p8 = scmp.lt.s32.totalorder %s94_s0, %s94_s0 }
  0x52   :  { %p4308_p7 = scmp.ne.s32.totalorder %s94_s0, %s4307_s22  ;;  %p4313_p9 = scmp.lt.s32.totalorder %s4307_s22, %s4307_s22 }
  0x54   :  { %p4314_p10 = por %p4313_p9, %p4312_p8 }
  0x56   :  { %p4315_p11 = pnand %p4314_p10, %p4308_p7 }
  0x58   :  { %4318 = shalt.err (!%p4315_p11)
}
  0x59   :  { %99 = dma.hbm_to_vmem [thread:$0]  %s4930_s11, 3840, %s94_s0, [#allocation9], %s4357_s3, %s4357_s3, %s4358_s27  }
  0x5a   :  { %4341 = dma.done.wait [#allocation3], 8192  }
  0x5b   :  { %4342 = vsyncadd [#allocation3], 4294959104 }
  0x5c   :  { %4343 = dma.done.wait [#allocation6], 10368  }
  0x5d   :  { %4344 = vsyncadd [#allocation6], 4294956928 }
  0x5e   :  { %4345 = dma.done.wait [#allocation9], 7680  }
  0x5f   :  { %4346 = vsyncadd [#allocation9], 4294959616  ;;  %v4360_v0 = vmov 0   ;;  %s4943_s26 = sld [smem:[#allocation17_spill]]  ;;  %s4944_s21 = sld [smem:[#allocation16_spill]]  ;;  %vm287_vm0 = vcmask 523264  }
  0x60   :  { %326 = vmatprep.mubr.bf16.mxu0 %v4360_v0  ;;  %379 = vmatprep.mubr.bf16.mxu1 %v4360_v0  ;;  %v3919_v21 = vld [vmem:[#allocation2 + $0x4] ss:$16 sps:$4 sm:$0xff]   ;;  %v3917_v23 = vld [vmem:[#allocation2] ss:$16 sps:$4 sm:$0xff]   ;;  %v3922_v34 = vld [vmem:[#allocation2 + $0xc] ss:$16 sps:$4 sm:$0xff]  }
  0x61   :  { %v3925_v25 = vld [vmem:[#allocation2 + $0x24] ss:$16 sps:$4 sm:$0xff]   ;;  %v3923_v28 = vld [vmem:[#allocation2 + $0x20] ss:$16 sps:$4 sm:$0xff]   ;;  %v3920_v37 = vld [vmem:[#allocation2 + $0x8] ss:$16 sps:$4 sm:$0xff]  }
  0x62   :  { %v3931_v30 = vld [vmem:[#allocation2 + $0x44] ss:$16 sps:$4 sm:$0xff]   ;;  %v3929_v32 = vld [vmem:[#allocation2 + $0x40] ss:$16 sps:$4 sm:$0xff]   ;;  %v3928_v38 = vld [vmem:[#allocation2 + $0x2c] ss:$16 sps:$4 sm:$0xff]  }
  0x63   :  { %v3937_v33 = vld [vmem:[#allocation2 + $0x64] ss:$16 sps:$4 sm:$0xff]   ;;  %v3935_v35 = vld [vmem:[#allocation2 + $0x60] ss:$16 sps:$4 sm:$0xff]   ;;  %v3926_v41 = vld [vmem:[#allocation2 + $0x28] ss:$16 sps:$4 sm:$0xff]  }
  0x64   :  { %v3943_v36 = vld [vmem:[#allocation2 + $0x84] ss:$16 sps:$4 sm:$0xff]   ;;  %v3941_v39 = vld [vmem:[#allocation2 + $0x80] ss:$16 sps:$4 sm:$0xff]   ;;  %v3934_v42 = vld [vmem:[#allocation2 + $0x4c] ss:$16 sps:$4 sm:$0xff]  }
  0x65   :  { %v3889_v1 = vld [vmem:[%s4943_s26 + $0x4] ss:$20 sps:$4 sm:$0xff]   ;;  %v3891_v2 = vld [vmem:[%s4943_s26 + $0xc] ss:$20 sps:$4 sm:$0xff]   ;;  %v3894_v4 = vld [vmem:[%s4943_s26 + $0x8] ss:$20 sps:$4 sm:$0xff]  }
  0x66   :  { %294 = vmatprep.subr.bf16.mxu0 %v3889_v1  ;;  %v3893_v3 = vld [vmem:[%s4943_s26] ss:$20 sps:$4 sm:$0xff]   ;;  %347 = vmatprep.subr.bf16.mxu1 %v3891_v2  ;;  %v3899_v7 = vld [vmem:[%s4943_s26 + $0x28] ss:$20 sps:$4 sm:$0xff]   ;;  %v3900_v8 = vld [vmem:[%s4943_s26 + $0x30] ss:$20 sps:$4 sm:$0xff]  }
  0x67   :  { %v3895_v5 = vld [vmem:[%s4943_s26 + $0x2c] ss:$20 sps:$4 sm:$0xff]   ;;  %295 = vmatpush1.bf16.msra.mxu0 %v3893_v3  ;;  %348 = vmatpush1.bf16.msra.mxu1 %v3894_v4  ;;  %v3897_v6 = vld [vmem:[%s4943_s26 + $0x34] ss:$20 sps:$4 sm:$0xff]   ;;  %v3903_v10 = vld [vmem:[%s4943_s26 + $0x5c] ss:$20 sps:$4 sm:$0xff]  }
  0x68   :  { %296 = vmatprep.subr.bf16.mxu0 %v3895_v5  ;;  %349 = vmatprep.subr.bf16.mxu1 %v3897_v6  ;;  %v3901_v9 = vld [vmem:[%s4943_s26 + $0x54] ss:$20 sps:$4 sm:$0xff]   ;;  %v3905_v11 = vld [vmem:[%s4943_s26 + $0x50] ss:$20 sps:$4 sm:$0xff]   ;;  %v3906_v12 = vld [vmem:[%s4943_s26 + $0x58] ss:$20 sps:$4 sm:$0xff]  }
  0x69   :  { %v3907_v13 = vld [vmem:[%s4943_s26 + $0x7c] ss:$20 sps:$4 sm:$0xff]   ;;  %v3909_v14 = vld [vmem:[%s4943_s26 + $0x84] ss:$20 sps:$4 sm:$0xff]   ;;  %v3912_v16 = vld [vmem:[%s4943_s26 + $0x80] ss:$20 sps:$4 sm:$0xff]  }
  0x6a   :  { %v3911_v15 = vld [vmem:[%s4943_s26 + $0x78] ss:$20 sps:$4 sm:$0xff]   ;;  %v126_v17 = vld [vmem:[%s4944_s21] sm:$0xff]  ;;  %v128_v24 = vld [vmem:[%s4944_s21 + $0x10] sm:$0xff]  ;;  %vm1350_vm1 = vcmask 1043456   ;;  %vm4363_vm2 = vmmov 0  }
  0x6b   :  { %297 = vmatpush1.bf16.msra.mxu0 %v3899_v7  ;;  %350 = vmatpush1.bf16.msra.mxu1 %v3900_v8  ;;  %v127_v18 = vld [vmem:[%s4944_s21 + $0x8] sm:$0xff]  ;;  %v3913_v19 = vld [vmem:[%s4943_s26 + $0x10] ss:$20 sps:$4 sm:$0xff]   ;;  %v129_v26 = vld [vmem:[%s4944_s21 + $0x18] sm:$0xf]  ;;  %vm1302_vm3 = vcmask 195584  }
  0x6c   :  { %298 = vmatprep.subr.bf16.mxu0 %v3901_v9  ;;  %351 = vmatprep.subr.bf16.mxu1 %v3903_v10  ;;  %v154_v20 = vpack.c.bf16 %v127_v18, %v126_v17  ;;  %v3914_v22 = vld [vmem:[%s4943_s26 + $0x38] ss:$20 sps:$4 sm:$0xff]   ;;  %v3915_v27 = vld [vmem:[%s4943_s26 + $0x60] ss:$20 sps:$4 sm:$0xff]   ;;  %v155_v29 = vpack.c.bf16 %v129_v26, %v128_v24  ;;  %v3916_v31 = vld [vmem:[%s4943_s26 + $0x88] ss:$20 sps:$4 sm:$0xff]  }
  0x6d   :  { %v3949_v40 = vld [vmem:[#allocation2 + $0xa4] ss:$16 sps:$4 sm:$0xff]   ;;  %v3947_v43 = vld [vmem:[#allocation2 + $0xa0] ss:$16 sps:$4 sm:$0xff]   ;;  %v3932_v45 = vld [vmem:[#allocation2 + $0x48] ss:$16 sps:$4 sm:$0xff]  }
  0x6e   :  { %v3955_v44 = vld [vmem:[#allocation2 + $0xc4] ss:$16 sps:$4 sm:$0xff]   ;;  %v3940_v46 = vld [vmem:[#allocation2 + $0x6c] ss:$16 sps:$4 sm:$0xff]   ;;  %v3953_v47 = vld [vmem:[#allocation2 + $0xc0] ss:$16 sps:$4 sm:$0xff]  }
  0x6f   :  { %299 = vmatpush1.bf16.msra.mxu0 %v3905_v11  ;;  %352 = vmatpush1.bf16.msra.mxu1 %v3906_v12  ;;  %v3961_v48 = vld [vmem:[#allocation2 + $0xe4] ss:$16 sps:$4 sm:$0xff]   ;;  %v3938_v49 = vld [vmem:[#allocation2 + $0x68] ss:$16 sps:$4 sm:$0xff]   ;;  %v3946_v50 = vld [vmem:[#allocation2 + $0x8c] ss:$16 sps:$4 sm:$0xff]  }
  0x70   :  { %300 = vmatprep.subr.bf16.mxu0 %v3907_v13  ;;  %353 = vmatprep.subr.bf16.mxu1 %v3909_v14  ;;  %v3959_v51 = vld [vmem:[#allocation2 + $0xe0] ss:$16 sps:$4 sm:$0xff]   ;;  %v3967_v52 = vld [vmem:[#allocation2 + $0x104] ss:$16 sps:$4 sm:$0xff]   ;;  %v3944_v53 = vld [vmem:[#allocation2 + $0x88] ss:$16 sps:$4 sm:$0xff]  }
  0x71   :  { %v3952_v54 = vld [vmem:[#allocation2 + $0xac] ss:$16 sps:$4 sm:$0xff]   ;;  %v3965_v55 = vld [vmem:[#allocation2 + $0x100] ss:$16 sps:$4 sm:$0xff]   ;;  %v3950_v56 = vld [vmem:[#allocation2 + $0xa8] ss:$16 sps:$4 sm:$0xff]  }
  0x72   :  { %v3973_v57 = vld [vmem:[#allocation2 + $0x124] ss:$16 sps:$4 sm:$0xff]   ;;  %v3958_v58 = vld [vmem:[#allocation2 + $0xcc] ss:$16 sps:$4 sm:$0xff]   ;;  %v3971_v59 = vld [vmem:[#allocation2 + $0x120] ss:$16 sps:$4 sm:$0xff]  }
  0x73   :  { %301 = vmatpush1.bf16.msra.mxu0 %v3911_v15  ;;  %354 = vmatpush1.bf16.msra.mxu1 %v3912_v16  ;;  %v3979_v60 = vld [vmem:[#allocation2 + $0x144] ss:$16 sps:$4 sm:$0xff]   ;;  %v3956_v61 = vld [vmem:[#allocation2 + $0xc8] ss:$16 sps:$4 sm:$0xff]   ;;  %v3964_v62 = vld [vmem:[#allocation2 + $0xec] ss:$16 sps:$4 sm:$0xff]  }
  0x74   :  { %3660 = vmatprep.subr.bf16.mxu0 %v3913_v19  ;;  %867 = vmatprep.subr.bf16.mxu1 %v3919_v21  ;;  %v3977_v63 = vld [vmem:[#allocation2 + $0x140] ss:$16 sps:$4 sm:$0xff]   ;;  %v3985_v1 = vld [vmem:[#allocation2 + $0x164] ss:$16 sps:$4 sm:$0xff]   ;;  %v3962_v2 = vld [vmem:[#allocation2 + $0xe8] ss:$16 sps:$4 sm:$0xff]  }
  0x75   :  { %v3970_v3 = vld [vmem:[#allocation2 + $0x10c] ss:$16 sps:$4 sm:$0xff]   ;;  %v3983_v4 = vld [vmem:[#allocation2 + $0x160] ss:$16 sps:$4 sm:$0xff]   ;;  %v3991_v5 = vld [vmem:[#allocation2 + $0x184] ss:$16 sps:$4 sm:$0xff]  }
  0x76   :  { %3290 = vmatmul.mubr.msk.bf16.vlgmr.msra.gmra.mrb[0].mxu0 %vm287_vm0, %v154_v20  ;;  %3292 = vmatmul.mubr.msk.bf16.vlgmr.msra.gmra.mrb[0].mxu1 %vm287_vm0, %v154_v20  ;;  %v3968_v6 = vld [vmem:[#allocation2 + $0x108] ss:$16 sps:$4 sm:$0xff]   ;;  %v3976_v7 = vld [vmem:[#allocation2 + $0x12c] ss:$16 sps:$4 sm:$0xff]   ;;  %v3989_v8 = vld [vmem:[#allocation2 + $0x180] ss:$16 sps:$4 sm:$0xff]  }
  0x77   :  { %336 = vmatprep.mubr.bf16.mxu0 %v4360_v0  ;;  %389 = vmatprep.mubr.bf16.mxu1 %v4360_v0  ;;  %v3997_v9 = vld [vmem:[#allocation2 + $0x1a4] ss:$16 sps:$4 sm:$0xff]   ;;  %v3974_v10 = vld [vmem:[#allocation2 + $0x128] ss:$16 sps:$4 sm:$0xff]   ;;  %v3982_v11 = vld [vmem:[#allocation2 + $0x14c] ss:$16 sps:$4 sm:$0xff]  }
  0x78   :  { %3661 = vmatpush3.bf16.msra.mxu0 %v3913_v19  ;;  %868 = vmatpush1.bf16.msra.mxu1 %v3917_v23  ;;  %v3995_v12 = vld [vmem:[#allocation2 + $0x1a0] ss:$16 sps:$4 sm:$0xff]   ;;  %v3980_v13 = vld [vmem:[#allocation2 + $0x148] ss:$16 sps:$4 sm:$0xff]   ;;  %v3988_v14 = vld [vmem:[#allocation2 + $0x16c] ss:$16 sps:$4 sm:$0xff]  }
  0x79   :  { %3662 = vmatprep.subr.bf16.mxu0 %v3914_v22  ;;  %869 = vmatprep.subr.bf16.mxu1 %v3925_v25  ;;  %v3986_v15 = vld [vmem:[#allocation2 + $0x168] ss:$16 sps:$4 sm:$0xff]   ;;  %v3994_v16 = vld [vmem:[#allocation2 + $0x18c] ss:$16 sps:$4 sm:$0xff]   ;;  %v4009_v24 = vld [vmem:[#allocation2 + $0x1e4] ss:$16 sps:$4 sm:$0xff]  }
  0x7a   :  { %v3992_v17 = vld [vmem:[#allocation2 + $0x188] ss:$16 sps:$4 sm:$0xff]   ;;  %v4000_v18 = vld [vmem:[#allocation2 + $0x1ac] ss:$16 sps:$4 sm:$0xff]   ;;  %v4007_v26 = vld [vmem:[#allocation2 + $0x1e0] ss:$16 sps:$4 sm:$0xff]  }
  0x7b   :  { %v3998_v19 = vld [vmem:[#allocation2 + $0x1a8] ss:$16 sps:$4 sm:$0xff]   ;;  %v4006_v21 = vld [vmem:[#allocation2 + $0x1cc] ss:$16 sps:$4 sm:$0xff]   ;;  %vm1346_vm4 = vcmask 457728   ;;  %vm2593_vm5 = vcmask 982016  }
  0x7c   :  { %3663 = vmatpush3.bf16.msra.mxu0 %v3914_v22  ;;  %870 = vmatpush1.bf16.msra.mxu1 %v3923_v28  ;;  %v4001_v22 = vld [vmem:[#allocation2 + $0x1c0] ss:$16 sps:$4 sm:$0xff]   ;;  %v4004_v23 = vld [vmem:[#allocation2 + $0x1c8] ss:$16 sps:$4 sm:$0xff]   ;;  %v4012_v25 = vld [vmem:[#allocation2 + $0x1ec] ss:$16 sps:$4 sm:$0xff]  }
  0x7d   :  { %3664 = vmatprep.subr.bf16.mxu0 %v3915_v27  ;;  %871 = vmatprep.subr.bf16.mxu1 %v3931_v30  ;;  %v4015_v28 = vld [vmem:[#allocation5 + $0x4] ss:$8 sps:$4 sm:$0xff]   ;;  %vm2954_vm10 = vcmask 785408   ;;  %vm3201_vm12 = vcmask 1045504   ;;  %vm3197_vm14 = vcmask 490496   ;;  %vm3251_vm15 = vcmask 17408  }
  0x7e   :  { %3291 = vmatmul.mubr.msk.bf16.gmra.mrb[4].mxu0 %vm287_vm0, %v155_v29  ;;  %3293 = vmatmul.mubr.msk.bf16.gmra.mrb[4].mxu1 %vm287_vm0, %v155_v29 }
  0x7f   :  { %3668 = vmatprep.mubr.msk.bf16.mxu0 %vm287_vm0, %v154_v20  ;;  %v4003_v20 = vld [vmem:[#allocation2 + $0x1c4] ss:$16 sps:$4 sm:$0xff]  }
  0x80   :  { %3665 = vmatpush3.bf16.msra.mxu0 %v3915_v27  ;;  %872 = vmatpush1.bf16.msra.mxu1 %v3929_v32  ;;  %v4010_v27 = vld [vmem:[#allocation2 + $0x1e8] ss:$16 sps:$4 sm:$0xff]  }
  0x81   :  { %3666 = vmatprep.subr.bf16.mxu0 %v3916_v31  ;;  %873 = vmatprep.subr.bf16.mxu1 %v3937_v33  ;;  %v156_v33 = vld [vmem:[%s4921_s2] sm:$0x1f] }
  0x84   :  { %3667 = vmatpush3.bf16.msra.mxu0 %v3916_v31  ;;  %874 = vmatpush1.bf16.msra.mxu1 %v3935_v35 }
  0x85   :  { %920 = vmatprep.subr.bf16.mxu0 %v3922_v34  ;;  %875 = vmatprep.subr.bf16.mxu1 %v3943_v36 }
  0x87   :  { %3669 = vmatmul.mubr.msk.bf16.vlgmr.msra.gmra.mrb[8].mxu0 %vm287_vm0, %v155_v29  ;;  %v158_v29 = vlaneseq }
  0x88   :  { %921 = vmatpush1.bf16.msra.mxu0 %v3920_v37  ;;  %876 = vmatpush1.bf16.msra.mxu1 %v3941_v39 }
  0x89   :  { %922 = vmatprep.subr.bf16.mxu0 %v3928_v38  ;;  %877 = vmatprep.subr.bf16.mxu1 %v3949_v40  ;;  %v4602_v30 = vshrl.u32 %v158_v29, 7  ;;  %v4024_v29 = vld [vmem:[#allocation5 + $0x34] ss:$8 sps:$4 sm:$0xff]  }
  0x8b   :  { %v4605_v31 = vsub.s32 0, %v4602_v30  ;;  %v4608_v32 = vsub.s32 2, %v4602_v30  ;;  %v4614_v34 = vsub.s32 1, %v4602_v30  ;;  %v4617_v35 = vsub.s32 3, %v4602_v30 }
  0x8c   :  { %923 = vmatpush1.bf16.msra.mxu0 %v3926_v41  ;;  %878 = vmatpush1.bf16.msra.mxu1 %v3947_v43 }
  0x8d   :  { %924 = vmatprep.subr.bf16.mxu0 %v3934_v42  ;;  %879 = vmatprep.subr.bf16.mxu1 %v3955_v44  ;;  %v161_v36 = vrot.slane %v156_v33, %v4605_v31  ;;  %v169_v37 = vrot.slane %v156_v33, %v4608_v32  ;;  %v165_v38 = vrot.slane %v156_v33, %v4614_v34 }
  0x8e   :  { %v173_v39 = vrot.slane %v156_v33, %v4617_v35 }
  0x90   :  { %925 = vmatpush1.bf16.msra.mxu0 %v3932_v45  ;;  %880 = vmatpush1.bf16.msra.mxu1 %v3953_v47 }
  0x91   :  { %926 = vmatprep.subr.bf16.mxu0 %v3940_v46  ;;  %881 = vmatprep.subr.bf16.mxu1 %v3961_v48 }
  0x94   :  { %927 = vmatpush1.bf16.msra.mxu0 %v3938_v49  ;;  %882 = vmatpush1.bf16.msra.mxu1 %v3959_v51 }
  0x95   :  { %928 = vmatprep.subr.bf16.mxu0 %v3946_v50  ;;  %883 = vmatprep.subr.bf16.mxu1 %v3967_v52 }
  0x98   :  { %929 = vmatpush1.bf16.msra.mxu0 %v3944_v53  ;;  %884 = vmatpush1.bf16.msra.mxu1 %v3965_v55 }
  0x99   :  { %930 = vmatprep.subr.bf16.mxu0 %v3952_v54  ;;  %885 = vmatprep.subr.bf16.mxu1 %v3973_v57 }
  0x9c   :  { %931 = vmatpush1.bf16.msra.mxu0 %v3950_v56  ;;  %886 = vmatpush1.bf16.msra.mxu1 %v3971_v59 }
  0x9d   :  { %932 = vmatprep.subr.bf16.mxu0 %v3958_v58  ;;  %887 = vmatprep.subr.bf16.mxu1 %v3979_v60 }
  0xa0   :  { %933 = vmatpush1.bf16.msra.mxu0 %v3956_v61  ;;  %888 = vmatpush1.bf16.msra.mxu1 %v3977_v63 }
  0xa1   :  { %934 = vmatprep.subr.bf16.mxu0 %v3964_v62  ;;  %889 = vmatprep.subr.bf16.mxu1 %v3985_v1  ;;  %v4013_v1 = vld [vmem:[#allocation5] ss:$8 sps:$4 sm:$0xff]  }
  0xa4   :  { %935 = vmatpush1.bf16.msra.mxu0 %v3962_v2  ;;  %890 = vmatpush1.bf16.msra.mxu1 %v3983_v4 }
  0xa5   :  { %936 = vmatprep.subr.bf16.mxu0 %v3970_v3  ;;  %891 = vmatprep.subr.bf16.mxu1 %v3991_v5 }
  0xa8   :  { %937 = vmatpush1.bf16.msra.mxu0 %v3968_v6  ;;  %892 = vmatpush1.bf16.msra.mxu1 %v3989_v8  ;;  %v4018_v6 = vld [vmem:[#allocation5 + $0x14] ss:$8 sps:$4 sm:$0xff]  }
  0xa9   :  { %938 = vmatprep.subr.bf16.mxu0 %v3976_v7  ;;  %893 = vmatprep.subr.bf16.mxu1 %v3997_v9 }
  0xac   :  { %939 = vmatpush1.bf16.msra.mxu0 %v3974_v10  ;;  %894 = vmatpush1.bf16.msra.mxu1 %v3995_v12 }
  0xad   :  { %940 = vmatprep.subr.bf16.mxu0 %v3982_v11  ;;  %895 = vmatprep.subr.bf16.mxu1 %v4003_v20  ;;  %v176_v11 = vsub.s32 4, %v4602_v30  ;;  %v4016_v20 = vld [vmem:[#allocation5 + $0x10] ss:$8 sps:$4 sm:$0xff]  }
  0xb0   :  { %941 = vmatpush1.bf16.msra.mxu0 %v3980_v13  ;;  %896 = vmatpush1.bf16.msra.mxu1 %v4001_v22  ;;  %v4021_v22 = vld [vmem:[#allocation5 + $0x24] ss:$8 sps:$4 sm:$0xff]  }
  0xb1   :  { %942 = vmatprep.subr.bf16.mxu0 %v3988_v14  ;;  %897 = vmatprep.subr.bf16.mxu1 %v4009_v24  ;;  %v4624_v24 = vrot.slane %v156_v33, %v176_v11 }
  0xb4   :  { %943 = vmatpush1.bf16.msra.mxu0 %v3986_v15  ;;  %898 = vmatpush1.bf16.msra.mxu1 %v4007_v26 }
  0xb5   :  { %944 = vmatprep.subr.bf16.mxu0 %v3994_v16  ;;  %1189 = vmatprep.subr.bf16.mxu1 %v4015_v28 }
  0xb8   :  { %945 = vmatpush1.bf16.msra.mxu0 %v3992_v17 }
  0xb9   :  { %946 = vmatprep.subr.bf16.mxu0 %v4000_v18 }
  0xbc   :  { %947 = vmatpush1.bf16.msra.mxu0 %v3998_v19 }
  0xbd   :  { %948 = vmatprep.subr.bf16.mxu0 %v4006_v21 }
  0xc0   :  { %949 = vmatpush1.bf16.msra.mxu0 %v4004_v23 }
  0xc1   :  { %950 = vmatprep.subr.bf16.mxu0 %v4012_v25 }
  0xc4   :  { %951 = vmatpush1.bf16.msra.mxu0 %v4010_v27  ;;  %v4019_v27 = vld [vmem:[#allocation5 + $0x20] ss:$8 sps:$4 sm:$0xff]  }
 0x149   :  { %v328_v40 = vpop.f32.mrb[0].mxu0  ;;  %v381_v41 = vpop.f32.mrb[0].mxu1 }
 0x14a   :  { %v329_v42 = vadd.f32 %v328_v40, %v161_v36  ;;  %v382_v43 = vadd.f32 %v381_v41, %v169_v37  ;;  %v330_v44 = vpop.f32.mrb[1].mxu0  ;;  %v383_v45 = vpop.f32.mrb[1].mxu1  ;;  %v4027_v40 = vld [vmem:[#allocation5 + $0x44] ss:$8 sps:$4 sm:$0xff]   ;;  %v4025_v41 = vld [vmem:[#allocation5 + $0x40] ss:$8 sps:$4 sm:$0xff]  }
 0x14b   :  { %v331_v46 = vadd.f32 %v330_v44, %v165_v38  ;;  %v384_v47 = vadd.f32 %v383_v45, %v173_v39  ;;  %v332_v48 = vpop.f32.mrb[2].mxu0  ;;  %v385_v49 = vpop.f32.mrb[2].mxu1  ;;  %v4033_v44 = vld [vmem:[#allocation5 + $0x64] ss:$8 sps:$4 sm:$0xff]   ;;  %v4031_v45 = vld [vmem:[#allocation5 + $0x60] ss:$8 sps:$4 sm:$0xff]  }
 0x14c   :  { %v449_v50 = vmax.f32 %v329_v42, %v382_v43  ;;  %v333_v51 = vadd.f32 %v332_v48, %v161_v36  ;;  %v386_v52 = vadd.f32 %v385_v49, %v169_v37  ;;  %v334_v53 = vpop.f32.mrb[3].mxu0  ;;  %v387_v54 = vpop.f32.mrb[3].mxu1  ;;  %v4030_v42 = vld [vmem:[#allocation5 + $0x54] ss:$8 sps:$4 sm:$0xff]   ;;  %v4028_v43 = vld [vmem:[#allocation5 + $0x50] ss:$8 sps:$4 sm:$0xff]  }
 0x14d   :  { %v450_v55 = vmax.f32 %v331_v46, %v384_v47  ;;  %v335_v56 = vadd.f32 %v334_v53, %v165_v38  ;;  %v388_v57 = vadd.f32 %v387_v54, %v173_v39  ;;  %v4036_v46 = vld [vmem:[#allocation5 + $0x74] ss:$8 sps:$4 sm:$0xff]   ;;  %v4034_v47 = vld [vmem:[#allocation5 + $0x70] ss:$8 sps:$4 sm:$0xff]   ;;  %v4039_v48 = vld [vmem:[#allocation5 + $0x84] ss:$8 sps:$4 sm:$0xff]  }
 0x14e   :  { %v451_v58 = vmax.f32 %v333_v51, %v386_v52  ;;  %v4037_v49 = vld [vmem:[#allocation5 + $0x80] ss:$8 sps:$4 sm:$0xff]   ;;  %v4040_v51 = vld [vmem:[#allocation5 + $0x90] ss:$8 sps:$4 sm:$0xff]   ;;  %v4045_v52 = vld [vmem:[#allocation5 + $0xa4] ss:$8 sps:$4 sm:$0xff]  }
 0x14f   :  { %v452_v59 = vmax.f32 %v335_v56, %v388_v57  ;;  %v4043_v53 = vld [vmem:[#allocation5 + $0xa0] ss:$8 sps:$4 sm:$0xff]   ;;  %v4048_v54 = vld [vmem:[#allocation5 + $0xb4] ss:$8 sps:$4 sm:$0xff]   ;;  %v4051_v56 = vld [vmem:[#allocation5 + $0xc4] ss:$8 sps:$4 sm:$0xff]  }
 0x150   :  { %v521_v60 = vpack.c.bf16 %v451_v58, %v449_v50  ;;  %v4042_v50 = vld [vmem:[#allocation5 + $0x94] ss:$8 sps:$4 sm:$0xff]   ;;  %v4049_v57 = vld [vmem:[#allocation5 + $0xc0] ss:$8 sps:$4 sm:$0xff]  }
 0x151   :  { %v338_v61 = vpop.f32.mrb[4].mxu0  ;;  %v391_v62 = vpop.f32.mrb[4].mxu1  ;;  %v522_v63 = vpack.c.bf16 %v452_v59, %v450_v55  ;;  %v4046_v55 = vld [vmem:[#allocation5 + $0xb0] ss:$8 sps:$4 sm:$0xff]   ;;  %v4054_v58 = vld [vmem:[#allocation5 + $0xd4] ss:$8 sps:$4 sm:$0xff]  }
 0x152   :  { %v339_v2 = vadd.f32 %v338_v61, %v161_v36  ;;  %v392_v3 = vadd.f32 %v391_v62, %v169_v37  ;;  %v340_v4 = vpop.f32.mrb[5].mxu0  ;;  %v393_v5 = vpop.f32.mrb[5].mxu1  ;;  %v4052_v59 = vld [vmem:[#allocation5 + $0xd0] ss:$8 sps:$4 sm:$0xff]   ;;  %v4055_v61 = vld [vmem:[#allocation5 + $0xe0] ss:$8 sps:$4 sm:$0xff]  }
 0x153   :  { %v341_v7 = vadd.f32 %v340_v4, %v165_v38  ;;  %v394_v8 = vadd.f32 %v393_v5, %v173_v39  ;;  %v342_v9 = vpop.f32.mrb[6].mxu0  ;;  %v395_v10 = vpop.f32.mrb[6].mxu1  ;;  %899 = vmatprep.mubr.bf16.mxu1 %v522_v63  ;;  %952 = vmatprep.mubr.bf16.mxu0 %v522_v63  ;;  %v4060_v62 = vld [vmem:[#allocation5 + $0xf4] ss:$8 sps:$4 sm:$0xff]   ;;  %v4058_v63 = vld [vmem:[#allocation5 + $0xf0] ss:$8 sps:$4 sm:$0xff]  }
 0x154   :  { %v453_v12 = vmax.f32 %v339_v2, %v392_v3  ;;  %v343_v13 = vadd.f32 %v342_v9, %v161_v36  ;;  %v396_v14 = vadd.f32 %v395_v10, %v169_v37  ;;  %v344_v15 = vpop.f32.mrb[7].mxu0  ;;  %v397_v16 = vpop.f32.mrb[7].mxu1  ;;  %900 = vmatmul.mubr.bf16.vlgmr.msra.gmra.mrb[8].mxu1 %v521_v60  ;;  %953 = vmatmul.mubr.bf16.vlgmr.msra.gmra.mrb[12].mxu0 %v521_v60  ;;  %v4057_v60 = vld [vmem:[#allocation5 + $0xe4] ss:$8 sps:$4 sm:$0xff]  }
 0x155   :  { %v454_v17 = vmax.f32 %v341_v7, %v394_v8  ;;  %v345_v18 = vadd.f32 %v344_v15, %v165_v38  ;;  %v398_v19 = vadd.f32 %v397_v16, %v173_v39  ;;  %1190 = vmatpush1.bf16.msra.mxu1 %v4013_v1  ;;  %v4022_v39 = vld [vmem:[#allocation5 + $0x30] ss:$8 sps:$4 sm:$0xff]   ;;  %v525_v1 = vld [vmem:[%s4923_s4] sm:$0xf] }
 0x156   :  { %v455_v21 = vmax.f32 %v343_v13, %v396_v14  ;;  %1191 = vmatprep.subr.bf16.mxu1 %v4018_v6  ;;  %v530_v2 = vrot.slane %v525_v1, %v4605_v31  ;;  %v538_v3 = vrot.slane %v525_v1, %v4608_v32  ;;  %v534_v4 = vrot.slane %v525_v1, %v4614_v34 }
 0x157   :  { %v456_v23 = vmax.f32 %v345_v18, %v398_v19  ;;  %v542_v5 = vrot.slane %v525_v1, %v4617_v35 }
 0x158   :  { %v523_v25 = vpack.c.bf16 %v455_v21, %v453_v12 }
 0x159   :  { %v524_v26 = vpack.c.bf16 %v456_v23, %v454_v17  ;;  %1192 = vmatpush1.bf16.msra.mxu1 %v4016_v20 }
 0x15a   :  { %v3670_v28 = vpop.f32.mrb[8].mxu0  ;;  %1193 = vmatprep.subr.bf16.mxu1 %v4021_v22 }
 0x15b   :  { %909 = vmatprep.mubr.bf16.mxu1 %v524_v26  ;;  %962 = vmatprep.mubr.bf16.mxu0 %v524_v26  ;;  %v4627_v30 = vadd.f32 %v3670_v28, %v4624_v24  ;;  %v4629_v36 = vpop.f32.mrb[9].mxu0 }
 0x15c   :  { %910 = vmatmul.mubr.bf16.gmra.mrb[12].mxu1 %v523_v25  ;;  %963 = vmatmul.mubr.bf16.gmra.mrb[16].mxu0 %v523_v25  ;;  %v3671_v37 = vpop.f32.mrb[10].mxu0 }
 0x15d   :  { %v4632_v33 = vadd.f32 %v3671_v37, %v4624_v24  ;;  %v4634_v38 = vpop.f32.mrb[11].mxu0  ;;  %1194 = vmatpush1.bf16.msra.mxu1 %v4019_v27 }
 0x15e   :  { %1195 = vmatprep.subr.bf16.mxu1 %v4024_v29 }
 0x161   :  { %1196 = vmatpush1.bf16.msra.mxu1 %v4022_v39 }
 0x162   :  { %1197 = vmatprep.subr.bf16.mxu1 %v4027_v40 }
 0x165   :  { %1198 = vmatpush1.bf16.msra.mxu1 %v4025_v41 }
 0x166   :  { %1199 = vmatprep.subr.bf16.mxu1 %v4030_v42 }
 0x169   :  { %1200 = vmatpush1.bf16.msra.mxu1 %v4028_v43 }
 0x16a   :  { %1201 = vmatprep.subr.bf16.mxu1 %v4033_v44 }
 0x16d   :  { %1202 = vmatpush1.bf16.msra.mxu1 %v4031_v45 }
 0x16e   :  { %1203 = vmatprep.subr.bf16.mxu1 %v4036_v46 }
 0x171   :  { %1204 = vmatpush1.bf16.msra.mxu1 %v4034_v47 }
 0x172   :  { %1205 = vmatprep.subr.bf16.mxu1 %v4039_v48 }
 0x175   :  { %1206 = vmatpush1.bf16.msra.mxu1 %v4037_v49 }
 0x176   :  { %1207 = vmatprep.subr.bf16.mxu1 %v4042_v50 }
 0x179   :  { %1208 = vmatpush1.bf16.msra.mxu1 %v4040_v51 }
 0x17a   :  { %1209 = vmatprep.subr.bf16.mxu1 %v4045_v52 }
 0x17d   :  { %1210 = vmatpush1.bf16.msra.mxu1 %v4043_v53 }
 0x17e   :  { %1211 = vmatprep.subr.bf16.mxu1 %v4048_v54 }
 0x181   :  { %1212 = vmatpush1.bf16.msra.mxu1 %v4046_v55 }
 0x182   :  { %1213 = vmatprep.subr.bf16.mxu1 %v4051_v56 }
 0x185   :  { %1214 = vmatpush1.bf16.msra.mxu1 %v4049_v57 }
 0x186   :  { %1215 = vmatprep.subr.bf16.mxu1 %v4054_v58 }
 0x189   :  { %1216 = vmatpush1.bf16.msra.mxu1 %v4052_v59  ;;  %v1017_v59 = vld [vmem:[%s4925_s6] sm:$0x3]  ;;  %s4362_s6 = smov 96  }
 0x18a   :  { %1217 = vmatprep.subr.bf16.mxu1 %v4057_v60  ;;  %v1022_v60 = vrot.slane %v1017_v59, %v4605_v31 }
 0x18d   :  { %1218 = vmatpush1.bf16.msra.mxu1 %v4055_v61  ;;  %v1026_v61 = vrot.slane %v1017_v59, %v4614_v34 }
 0x18e   :  { %1219 = vmatprep.subr.bf16.mxu1 %v4060_v62 }
 0x191   :  { %1220 = vmatpush1.bf16.msra.mxu1 %v4058_v63 }
 0x227   :  { %v901_v6 = vpop.f32.mrb[8].mxu1  ;;  %v954_v7 = vpop.f32.mrb[12].mxu0 }
 0x228   :  { %v902_v8 = vadd.f32 %v901_v6, %v530_v2  ;;  %v955_v9 = vadd.f32 %v954_v7, %v538_v3  ;;  %v903_v10 = vpop.f32.mrb[9].mxu1  ;;  %v956_v11 = vpop.f32.mrb[13].mxu0 }
 0x229   :  { %v904_v12 = vadd.f32 %v903_v10, %v534_v4  ;;  %v957_v13 = vadd.f32 %v956_v11, %v542_v5  ;;  %v905_v14 = vpop.f32.mrb[10].mxu1  ;;  %v958_v15 = vpop.f32.mrb[14].mxu0 }
 0x22a   :  { %v973_v16 = vmax.f32 %v902_v8, %v955_v9  ;;  %v906_v17 = vadd.f32 %v905_v14, %v530_v2  ;;  %v959_v18 = vadd.f32 %v958_v15, %v538_v3  ;;  %v907_v19 = vpop.f32.mrb[11].mxu1  ;;  %v960_v20 = vpop.f32.mrb[15].mxu0 }
 0x22b   :  { %v974_v21 = vmax.f32 %v904_v12, %v957_v13  ;;  %v908_v22 = vadd.f32 %v907_v19, %v534_v4  ;;  %v961_v23 = vadd.f32 %v960_v20, %v542_v5  ;;  %v4061_v20 = vld [vmem:[#allocation7 + $0x1c] sm:$0xff]  }
 0x22c   :  { %v975_v25 = vmax.f32 %v906_v17, %v959_v18 }
 0x22d   :  { %v976_v26 = vmax.f32 %v908_v22, %v961_v23  ;;  %v4361_v22 = vmov 0.0   ;;  %v4062_v23 = vld [vmem:[#allocation7 + $0x24] sm:$0xff]  }
 0x22e   :  { %v1013_v27 = vpack.c.bf16 %v975_v25, %v973_v16  ;;  %3672 = vmatprep.subr.bf16.mxu0 %v4361_v22  ;;  %3720 = vmatprep.subr.bf16.mxu1 %v4361_v22 }
 0x22f   :  { %v911_v28 = vpop.f32.mrb[12].mxu1  ;;  %v964_v29 = vpop.f32.mrb[16].mxu0  ;;  %v1014_v37 = vpack.c.bf16 %v976_v26, %v974_v21  ;;  %3673 = vmatpush3.bf16.msra.mxu0 %v4061_v20  ;;  %v4063_v26 = vld [vmem:[#allocation7 + $0x2c] sm:$0xff]   ;;  %3680 = vmatprep.mubr.msk.bf16.mxu0 %vm4363_vm2, %v4361_v22 }
 0x230   :  { %v912_v39 = vadd.f32 %v911_v28, %v530_v2  ;;  %v965_v40 = vadd.f32 %v964_v29, %v538_v3  ;;  %v913_v41 = vpop.f32.mrb[13].mxu1  ;;  %v966_v42 = vpop.f32.mrb[17].mxu0  ;;  %3674 = vmatprep.subr.bf16.mxu0 %v4361_v22  ;;  %v4064_v28 = vld [vmem:[#allocation7 + $0x34] ss:$0 sps:$4 sm:$0xff]  }
 0x231   :  { %v914_v43 = vadd.f32 %v913_v41, %v534_v4  ;;  %v967_v44 = vadd.f32 %v966_v42, %v542_v5  ;;  %v915_v45 = vpop.f32.mrb[14].mxu1  ;;  %v968_v46 = vpop.f32.mrb[18].mxu0  ;;  %1221 = vmatprep.mubr.bf16.mxu1 %v1014_v37  ;;  %v1352_v29 = vsel %vm1350_vm1, %v4064_v28, 0 }
 0x232   :  { %v977_v47 = vmax.f32 %v912_v39, %v965_v40  ;;  %v916_v48 = vadd.f32 %v915_v45, %v530_v2  ;;  %v969_v49 = vadd.f32 %v968_v46, %v538_v3  ;;  %v917_v50 = vpop.f32.mrb[15].mxu1  ;;  %v970_v51 = vpop.f32.mrb[19].mxu0  ;;  %1222 = vmatmul.mubr.bf16.vlgmr.msra.gmra.mrb[16].mxu1 %v1013_v27  ;;  %v4077_v46 = vld [vmem:[#allocation7 + $0xfc] sm:$0xff]  }
 0x233   :  { %v978_v52 = vmax.f32 %v914_v43, %v967_v44  ;;  %v918_v53 = vadd.f32 %v917_v50, %v534_v4  ;;  %v971_v54 = vadd.f32 %v970_v51, %v542_v5  ;;  %3675 = vmatpush3.bf16.msra.mxu0 %v4062_v23  ;;  %3721 = vmatpush3.bf16.msra.mxu1 %v4077_v46 }
 0x234   :  { %v979_v55 = vmax.f32 %v916_v48, %v969_v49  ;;  %3676 = vmatprep.subr.bf16.mxu0 %v4361_v22  ;;  %3722 = vmatprep.subr.bf16.mxu1 %v4361_v22  ;;  %v4081_v48 = vld [vmem:[#allocation7 + $0x10c] sm:$0xff]   ;;  %v4083_v49 = vld [vmem:[#allocation7 + $0x114] ss:$0 sps:$4 sm:$0xff]   ;;  %v435_v51 = vadd.f32 %v4629_v36, %v4624_v24  ;;  %v4067_v36 = vld [vmem:[#allocation7 + $0x64] sm:$0xff]  }
 0x235   :  { %v980_v56 = vmax.f32 %v918_v53, %v971_v54  ;;  %v1692_v50 = vsel %vm1350_vm1, %v4083_v49, 0  ;;  %v4094_v49 = vld [vmem:[#allocation7 + $0x70] sm:$0xff]  }
 0x236   :  { %v1015_v57 = vpack.c.bf16 %v979_v55, %v977_v47  ;;  %v4079_v47 = vld [vmem:[#allocation7 + $0x104] sm:$0xff]   ;;  %v4065_v55 = vld [vmem:[#allocation7 + $0x54] sm:$0xff]  }
 0x237   :  { %v1016_v58 = vpack.c.bf16 %v980_v56, %v978_v52  ;;  %3677 = vmatpush3.bf16.msra.mxu0 %v4063_v26  ;;  %3723 = vmatpush3.bf16.msra.mxu1 %v4079_v47  ;;  %v4085_v26 = vld [vmem:[#allocation7 + $0x16c] sm:$0xff]  }
 0x238   :  { %3678 = vmatprep.subr.bf16.mxu0 %v4361_v22  ;;  %3724 = vmatprep.subr.bf16.mxu1 %v4361_v22 }
 0x239   :  { %1231 = vmatprep.mubr.bf16.mxu1 %v1016_v58 }
 0x23a   :  { %1232 = vmatmul.mubr.bf16.gmra.mrb[20].mxu1 %v1015_v57 }
 0x23b   :  { %3679 = vmatpush3.bf16.msra.mxu0 %v1352_v29  ;;  %3728 = vmatprep.mubr.msk.bf16.mxu1 %vm4363_vm2, %v4361_v22 }
 0x23c   :  { %3684 = vmatprep.subr.bf16.mxu0 %v4361_v22  ;;  %3725 = vmatpush3.bf16.msra.mxu1 %v4081_v48  ;;  %v4093_v48 = vld [vmem:[#allocation7 + $0x38] sm:$0xff]  }
 0x23d   :  { %3726 = vmatprep.subr.bf16.mxu1 %v4361_v22 }
 0x240   :  { %3727 = vmatpush3.bf16.msra.mxu1 %v1692_v50 }
 0x241   :  { %3744 = vmatprep.subr.bf16.mxu1 %v4361_v22 }
 0x305   :  { %v1223_v62 = vpop.f32.mrb[16].mxu1 }
 0x306   :  { %v1224_v63 = vadd.f32 %v1223_v62, %v1022_v60  ;;  %v1225_v1 = vpop.f32.mrb[17].mxu1  ;;  %v4068_v62 = vld [vmem:[#allocation7 + $0x6c] ss:$0 sps:$4 sm:$0xff]  }
 0x307   :  { %v1226_v2 = vadd.f32 %v1225_v1, %v1026_v61  ;;  %v1227_v3 = vpop.f32.mrb[18].mxu1  ;;  %v4069_v1 = vld [vmem:[#allocation7 + $0x8c] sm:$0xff]  }
 0x308   :  { %v1228_v4 = vadd.f32 %v1227_v3, %v1022_v60  ;;  %v1229_v5 = vpop.f32.mrb[19].mxu1  ;;  %v4070_v3 = vld [vmem:[#allocation7 + $0x94] sm:$0xff]  }
 0x309   :  { %v1230_v6 = vadd.f32 %v1229_v5, %v1026_v61  ;;  %v1242_v7 = vmax.f32 %v1224_v63, %v1226_v2  ;;  %v1436_v63 = vsel %vm1350_vm1, %v4068_v62, 0  ;;  %v438_v5 = vadd.f32 %v4634_v38, %v4624_v24  ;;  %v4074_v24 = vld [vmem:[#allocation7 + $0xcc] sm:$0xff]   ;;  %v4075_v38 = vld [vmem:[#allocation7 + $0xd4] sm:$0xff]  }
 0x30a   :  { %v4104_v62 = vld [vmem:[#allocation7 + $0xe8] sm:$0xff]  }
 0x30b   :  { %1250 = vrot.lane.b32.xlu0 %v1242_v7, %s4357_s3  ;;  %v1243_v8 = vmax.f32 %v1228_v4, %v1230_v6  ;;  %v4071_v6 = vld [vmem:[#allocation7 + $0x9c] sm:$0xff]  }
 0x30d   :  { %v1233_v9 = vpop.f32.mrb[20].mxu1 }
 0x30e   :  { %v1234_v10 = vadd.f32 %v1233_v9, %v1022_v60  ;;  %v1235_v11 = vpop.f32.mrb[21].mxu1 }
 0x30f   :  { %v1236_v12 = vadd.f32 %v1235_v11, %v1026_v61  ;;  %v1237_v13 = vpop.f32.mrb[22].mxu1  ;;  %1252 = vrot.lane.b32.xlu0 %v1243_v8, %s4357_s3  ;;  %v4073_v11 = vld [vmem:[#allocation7 + $0xc4] sm:$0xff]  }
 0x310   :  { %v1238_v14 = vadd.f32 %v1237_v13, %v1022_v60  ;;  %v1239_v15 = vpop.f32.mrb[23].mxu1  ;;  %v4076_v13 = vld [vmem:[#allocation7 + $0xdc] ss:$0 sps:$4 sm:$0xff]  }
 0x311   :  { %v1240_v16 = vadd.f32 %v1239_v15, %v1026_v61  ;;  %v1244_v17 = vmax.f32 %v1234_v10, %v1236_v12  ;;  %v4066_v61 = vld [vmem:[#allocation7 + $0x5c] sm:$0xff]   ;;  %v4078_v15 = vld [vmem:[#allocation7 + $0x134] sm:$0xff]  }
 0x313   :  { %v1245_v18 = vmax.f32 %v1238_v14, %v1240_v16  ;;  %v1606_v14 = vsel %vm1350_vm1, %v4076_v13, 0 }
 0x315   :  { %1256 = vrot.lane.b32.xlu0 %v1245_v18, %s4357_s3 }
 0x37d   :  { %v1251_v19 = vpop.permute.xlu0 %1250 }
 0x37e   :  { %v1262_v21 = vmax.f32 %v1242_v7, %v1251_v19  ;;  %v4072_v7 = vld [vmem:[#allocation7 + $0xa4] ss:$0 sps:$4 sm:$0xff]   ;;  %v4084_v19 = vld [vmem:[#allocation7 + $0x14c] ss:$0 sps:$4 sm:$0xff]  }
 0x37f   :  { %v1522_v10 = vsel %vm1350_vm1, %v4072_v7, 0  ;;  %v1776_v20 = vsel %vm1350_vm1, %v4084_v19, 0 }
 0x380   :  { %1270 = vrot.lane.b32.xlu1 %v1262_v21, %s4362_s6 }
 0x381   :  { %v1253_v25 = vpop.permute.xlu0 %1252 }
 0x382   :  { %v1263_v27 = vmax.f32 %v1243_v8, %v1253_v25 }
 0x384   :  { %1254 = vrot.lane.b32.xlu1 %v1244_v17, %s4357_s3  ;;  %s4364_s3 = smov 24  }
 0x387   :  { %v1257_v40 = vpop.permute.xlu0 %1256 }
 0x388   :  { %1272 = vrot.lane.b32.xlu1 %v1263_v27, %s4362_s6  ;;  %v1265_v42 = vmax.f32 %v1245_v18, %v1257_v40  ;;  %v4082_v18 = vld [vmem:[#allocation7 + $0x144] sm:$0xff]   ;;  %v4089_v40 = vld [vmem:[#allocation7 + $0x17c] sm:$0xff]  }
 0x3f2   :  { %v1271_v37 = vpop.permute.xlu1 %1270 }
 0x3f3   :  { %v1282_v39 = vmax.f32 %v1262_v21, %v1271_v37  ;;  %v4087_v37 = vld [vmem:[#allocation7 + $0x174] sm:$0xff]  }
 0x3f5   :  { %1290 = vrot.lane.b32.xlu0 %v1282_v39, %s4364_s3  ;;  %v4088_v39 = vld [vmem:[#allocation7 + $0x8] sm:$0xff]  }
 0x3f6   :  { %v1255_v41 = vpop.permute.xlu1 %1254 }
 0x3f7   :  { %v1264_v43 = vmax.f32 %v1244_v17, %v1255_v41  ;;  %v4080_v17 = vld [vmem:[#allocation7 + $0x13c] sm:$0xff]   ;;  %v4090_v41 = vld [vmem:[#allocation7 + $0x10] sm:$0xff]  }
 0x3f9   :  { %1274 = vrot.lane.b32.xlu1 %v1264_v43, %s4362_s6  ;;  %1276 = vrot.lane.b32.xlu0 %v1265_v42, %s4362_s6 }
 0x3fa   :  { %v1273_v44 = vpop.permute.xlu1 %1272 }
 0x3fb   :  { %v1283_v45 = vmax.f32 %v1263_v27, %v1273_v44  ;;  %v4086_v27 = vld [vmem:[#allocation7] sm:$0xff]  }
 0x3fd   :  { %1292 = vrot.lane.b32.xlu1 %v1283_v45, %s4364_s3 }
 0x467   :  { %v1291_v52 = vpop.permute.xlu0 %1290 }
 0x468   :  { %v1303_v53 = vsel %vm1302_vm3, %v435_v51, %v1291_v52  ;;  %v4096_v51 = vld [vmem:[#allocation7 + $0x78] sm:$0xff]   ;;  %v4097_v52 = vld [vmem:[#allocation7 + $0x48] sm:$0xff]  }
 0x469   :  { %v4673_v54 = vpack.c.bf16 %v1303_v53, %v1303_v53  ;;  %v4098_v53 = vld [vmem:[#allocation7 + $0x80] sm:$0xff]  }
 0x46b   :  { %v1324_v56 = vrot.slane %v4673_v54, 1  ;;  %v1275_v57 = vpop.permute.xlu1 %1274  ;;  %v1277_v58 = vpop.permute.xlu0 %1276  ;;  %v1410_v2 = vrot.slane %v4673_v54, 3 }
 0x46c   :  { %v1284_v59 = vmax.f32 %v1264_v43, %v1275_v57  ;;  %v1285_v60 = vmax.f32 %v1265_v42, %v1277_v58  ;;  %v4091_v42 = vld [vmem:[#allocation7 + $0x184] ss:$0 sps:$4 sm:$0xff]   ;;  %v4092_v43 = vld [vmem:[#allocation7 + $0x18] ss:$0 sps:$4 sm:$0xff]  }
 0x46d   :  { %3681 = vmatmul.mubr.msk.bf16.vlgmr.msra.gmra.mrb[20].mxu0 %vm1346_vm4, %v1324_v56  ;;  %v1862_v46 = vsel %vm1350_vm1, %v4091_v42, 0  ;;  %v1929_v47 = vsel %vm1350_vm1, %v4092_v43, 0  ;;  %v4100_v56 = vld [vmem:[#allocation7 + $0x88] ss:$0 sps:$4 sm:$0xff]   ;;  %v4126_v43 = vld [vmem:[#allocation8 + $0x28] ss:$16 sps:$4 sm:$0xff]  }
 0x46e   :  { %3685 = vmatpush3.bf16.msra.mxu0 %v4065_v55  ;;  %1294 = vrot.lane.b32.xlu0 %v1284_v59, %s4364_s3  ;;  %v4099_v55 = vld [vmem:[#allocation7 + $0x50] ss:$0 sps:$4 sm:$0xff]   ;;  %v2064_v58 = vsel %vm1350_vm1, %v4100_v56, 0  ;;  %v4101_v59 = vld [vmem:[#allocation7 + $0xa8] sm:$0xff]  }
 0x46f   :  { %1296 = vrot.lane.b32.xlu1 %v1285_v60, %s4364_s3  ;;  %3686 = vmatprep.subr.bf16.mxu0 %v4361_v22  ;;  %v1293_v4 = vpop.permute.xlu1 %1292  ;;  %v1997_v57 = vsel %vm1350_vm1, %v4099_v55, 0  ;;  %v4102_v60 = vld [vmem:[#allocation7 + $0xe0] sm:$0xff]   ;;  %v4123_v42 = vld [vmem:[#allocation8 + $0x20] ss:$16 sps:$4 sm:$0xff]  }
 0x470   :  { %3692 = vmatprep.mubr.msk.bf16.mxu0 %vm4363_vm2, %v4361_v22  ;;  %v1304_v8 = vsel %vm1302_vm3, %v438_v5, %v1293_v4  ;;  %v4109_v5 = vld [vmem:[#allocation7 + $0x118] sm:$0xff]  }
 0x471   :  { %v4695_v9 = vpack.c.bf16 %v1304_v8, %v1304_v8  ;;  %v4111_v8 = vld [vmem:[#allocation7 + $0x120] sm:$0xff]  }
 0x472   :  { %3687 = vmatpush3.bf16.msra.mxu0 %v4066_v61  ;;  %v1971_v61 = vrot.slane %v4673_v54, 2 }
 0x473   :  { %3688 = vmatprep.subr.bf16.mxu0 %v4361_v22  ;;  %v1496_v12 = vrot.slane %v4695_v9, 1  ;;  %v1580_v16 = vrot.slane %v4695_v9, 3  ;;  %v2106_v7 = vrot.slane %v4695_v9, 2 }
 0x476   :  { %3689 = vmatpush3.bf16.msra.mxu0 %v4067_v36  ;;  %v4103_v36 = vld [vmem:[#allocation7 + $0xb0] sm:$0xff]  }
 0x477   :  { %3690 = vmatprep.subr.bf16.mxu0 %v4361_v22 }
 0x47a   :  { %3691 = vmatpush3.bf16.msra.mxu0 %v1436_v63  ;;  %v4106_v63 = vld [vmem:[#allocation7 + $0xf0] sm:$0xff]  }
 0x47b   :  { %3696 = vmatprep.subr.bf16.mxu0 %v4361_v22 }
 0x47d   :  { %3693 = vmatmul.mubr.msk.bf16.vlgmr.msra.gmra.mrb[24].mxu0 %vm1346_vm4, %v1410_v2  ;;  %v4108_v2 = vld [vmem:[#allocation7 + $0xf8] ss:$0 sps:$4 sm:$0xff]  }
 0x47e   :  { %3697 = vmatpush3.bf16.msra.mxu0 %v4069_v1  ;;  %3704 = vmatprep.mubr.msk.bf16.mxu0 %vm4363_vm2, %v4361_v22  ;;  %v4107_v1 = vld [vmem:[#allocation7 + $0xc0] ss:$0 sps:$4 sm:$0xff]   ;;  %v2199_v4 = vsel %vm1350_vm1, %v4108_v2, 0 }
 0x47f   :  { %3698 = vmatprep.subr.bf16.mxu0 %v4361_v22  ;;  %v4156_v2 = vld [vmem:[#allocation8 + $0xc8] ss:$16 sps:$4 sm:$0xff]  }
 0x482   :  { %3699 = vmatpush3.bf16.msra.mxu0 %v4070_v3  ;;  %v2132_v3 = vsel %vm1350_vm1, %v4107_v1, 0  ;;  %v4153_v1 = vld [vmem:[#allocation8 + $0xc0] ss:$16 sps:$4 sm:$0xff]  }
 0x483   :  { %3700 = vmatprep.subr.bf16.mxu0 %v4361_v22 }
 0x486   :  { %3701 = vmatpush3.bf16.msra.mxu0 %v4071_v6  ;;  %v4110_v6 = vld [vmem:[#allocation7 + $0x150] sm:$0xff]  }
 0x487   :  { %3702 = vmatprep.subr.bf16.mxu0 %v4361_v22 }
 0x48a   :  { %3703 = vmatpush3.bf16.msra.mxu0 %v1522_v10  ;;  %v4112_v10 = vld [vmem:[#allocation7 + $0x158] sm:$0xff]  }
 0x48b   :  { %3708 = vmatprep.subr.bf16.mxu0 %v4361_v22 }
 0x48d   :  { %3705 = vmatmul.mubr.msk.bf16.vlgmr.msra.gmra.mrb[28].mxu0 %vm1346_vm4, %v1496_v12  ;;  %v4115_v12 = vld [vmem:[#allocation7 + $0x130] ss:$0 sps:$4 sm:$0xff]  }
 0x48e   :  { %3709 = vmatpush3.bf16.msra.mxu0 %v4073_v11  ;;  %3716 = vmatprep.mubr.msk.bf16.mxu0 %vm4363_vm2, %v4361_v22  ;;  %v4114_v11 = vld [vmem:[#allocation7 + $0x160] sm:$0xff]  }
 0x48f   :  { %3710 = vmatprep.subr.bf16.mxu0 %v4361_v22 }
 0x492   :  { %3711 = vmatpush3.bf16.msra.mxu0 %v4074_v24  ;;  %v4116_v24 = vld [vmem:[#allocation7 + $0x168] ss:$0 sps:$4 sm:$0xff]  }
 0x493   :  { %3712 = vmatprep.subr.bf16.mxu0 %v4361_v22  ;;  %v2334_v13 = vsel %vm1350_vm1, %v4116_v24, 0 }
 0x496   :  { %3713 = vmatpush3.bf16.msra.mxu0 %v4075_v38  ;;  %v2267_v38 = vsel %vm1350_vm1, %v4115_v12, 0 }
 0x497   :  { %3714 = vmatprep.subr.bf16.mxu0 %v4361_v22 }
 0x49a   :  { %3715 = vmatpush3.bf16.msra.mxu0 %v1606_v14 }
 0x49b   :  { %3732 = vmatprep.subr.bf16.mxu0 %v4361_v22 }
 0x49d   :  { %3717 = vmatmul.mubr.msk.bf16.vlgmr.msra.gmra.mrb[32].mxu0 %vm1346_vm4, %v1580_v16 }
 0x49e   :  { %3733 = vmatpush3.bf16.msra.mxu0 %v4078_v15  ;;  %3740 = vmatprep.mubr.msk.bf16.mxu0 %vm4363_vm2, %v4361_v22 }
 0x49f   :  { %3734 = vmatprep.subr.bf16.mxu0 %v4361_v22 }
 0x4a2   :  { %3735 = vmatpush3.bf16.msra.mxu0 %v4080_v17 }
 0x4a3   :  { %3736 = vmatprep.subr.bf16.mxu0 %v4361_v22 }
 0x4a6   :  { %3737 = vmatpush3.bf16.msra.mxu0 %v4082_v18 }
 0x4a7   :  { %3738 = vmatprep.subr.bf16.mxu0 %v4361_v22 }
 0x4aa   :  { %3739 = vmatpush3.bf16.msra.mxu0 %v1776_v20 }
 0x4ab   :  { %3756 = vmatprep.subr.bf16.mxu0 %v4361_v22 }
 0x4e0   :  { %v1295_v21 = vpop.permute.xlu0 %1294 }
 0x4e1   :  { %v1305_v23 = vsel %vm1302_vm3, %v4627_v30, %v1295_v21  ;;  %v1297_v30 = vpop.permute.xlu1 %1296 }
 0x4e2   :  { %v4720_v25 = vpack.c.bf16 %v1305_v23, %v1305_v23  ;;  %v1306_v44 = vsel %vm1302_vm3, %v4632_v33, %v1297_v30  ;;  %v4095_v33 = vld [vmem:[#allocation7 + $0x40] sm:$0xff]  }
 0x4e3   :  { %v4736_v45 = vpack.c.bf16 %v1306_v44, %v1306_v44  ;;  %v4131_v44 = vld [vmem:[#allocation8 + $0x44] ss:$16 sps:$4 sm:$0xff]  }
 0x4e4   :  { %v1666_v28 = vrot.slane %v4720_v25, 1  ;;  %v1750_v29 = vrot.slane %v4720_v25, 3  ;;  %v2241_v14 = vrot.slane %v4720_v25, 2 }
 0x4e5   :  { %v1836_v50 = vrot.slane %v4736_v45, 1 }
 0x4e6   :  { %3729 = vmatmul.mubr.msk.bf16.vlgmr.msra.gmra.mrb[24].mxu1 %vm1346_vm4, %v1666_v28  ;;  %3741 = vmatmul.mubr.msk.bf16.vlgmr.msra.gmra.mrb[36].mxu0 %vm1346_vm4, %v1750_v29  ;;  %v4122_v28 = vld [vmem:[#allocation8 + $0xc] ss:$16 sps:$4 sm:$0xff]  }
 0x4e7   :  { %3745 = vmatpush3.bf16.msra.mxu1 %v4085_v26  ;;  %3757 = vmatpush3.bf16.msra.mxu0 %v4086_v27  ;;  %v4119_v26 = vld [vmem:[#allocation8 + $0x4] ss:$16 sps:$4 sm:$0xff]   ;;  %v4120_v27 = vld [vmem:[#allocation8 + $0x8] ss:$16 sps:$4 sm:$0xff]  }
 0x4e8   :  { %3746 = vmatprep.subr.bf16.mxu1 %v4361_v22  ;;  %3758 = vmatprep.subr.bf16.mxu0 %v4361_v22 }
 0x4e9   :  { %3752 = vmatprep.mubr.msk.bf16.mxu1 %vm4363_vm2, %v4361_v22  ;;  %3764 = vmatprep.mubr.msk.bf16.mxu0 %vm4363_vm2, %v4361_v22 }
 0x4eb   :  { %3747 = vmatpush3.bf16.msra.mxu1 %v4087_v37  ;;  %3759 = vmatpush3.bf16.msra.mxu0 %v4088_v39 }
 0x4ec   :  { %3748 = vmatprep.subr.bf16.mxu1 %v4361_v22  ;;  %3760 = vmatprep.subr.bf16.mxu0 %v4361_v22 }
 0x4ef   :  { %3749 = vmatpush3.bf16.msra.mxu1 %v4089_v40  ;;  %3761 = vmatpush3.bf16.msra.mxu0 %v4090_v41  ;;  %v4125_v40 = vld [vmem:[#allocation8 + $0x24] ss:$16 sps:$4 sm:$0xff]   ;;  %v4128_v41 = vld [vmem:[#allocation8 + $0x2c] ss:$16 sps:$4 sm:$0xff]  }
 0x4f0   :  { %3750 = vmatprep.subr.bf16.mxu1 %v4361_v22  ;;  %3762 = vmatprep.subr.bf16.mxu0 %v4361_v22 }
 0x4f3   :  { %3751 = vmatpush3.bf16.msra.mxu1 %v1862_v46  ;;  %3763 = vmatpush3.bf16.msra.mxu0 %v1929_v47  ;;  %v4129_v46 = vld [vmem:[#allocation8 + $0x40] ss:$16 sps:$4 sm:$0xff]   ;;  %v4132_v47 = vld [vmem:[#allocation8 + $0x48] ss:$16 sps:$4 sm:$0xff]  }
 0x4f4   :  { %3768 = vmatprep.subr.bf16.mxu1 %v4361_v22  ;;  %3780 = vmatprep.subr.bf16.mxu0 %v4361_v22 }
 0x4f6   :  { %3753 = vmatmul.mubr.msk.bf16.vlgmr.msra.gmra.mrb[28].mxu1 %vm1346_vm4, %v1836_v50  ;;  %3765 = vmatmul.mubr.msk.bf16.vlgmr.msra.gmra.mrb[40].mxu0 %vm1346_vm4, %v4673_v54  ;;  %v4105_v54 = vld [vmem:[#allocation7 + $0xb8] sm:$0xff]   ;;  %v4138_v50 = vld [vmem:[#allocation8 + $0x68] ss:$16 sps:$4 sm:$0xff]  }
 0x4f7   :  { %3769 = vmatpush3.bf16.msra.mxu1 %v4093_v48  ;;  %3781 = vmatpush3.bf16.msra.mxu0 %v4094_v49  ;;  %v4137_v48 = vld [vmem:[#allocation8 + $0x64] ss:$16 sps:$4 sm:$0xff]   ;;  %v4135_v49 = vld [vmem:[#allocation8 + $0x60] ss:$16 sps:$4 sm:$0xff]  }
 0x4f8   :  { %3770 = vmatprep.subr.bf16.mxu1 %v4361_v22  ;;  %3782 = vmatprep.subr.bf16.mxu0 %v4361_v22 }
 0x4f9   :  { %3776 = vmatprep.mubr.msk.bf16.mxu1 %vm4363_vm2, %v4361_v22  ;;  %3788 = vmatprep.mubr.msk.bf16.mxu0 %vm4363_vm2, %v4361_v22 }
 0x4fb   :  { %3771 = vmatpush3.bf16.msra.mxu1 %v4095_v33  ;;  %3783 = vmatpush3.bf16.msra.mxu0 %v4096_v51  ;;  %v4140_v33 = vld [vmem:[#allocation8 + $0x6c] ss:$16 sps:$4 sm:$0xff]  }
 0x4fc   :  { %3772 = vmatprep.subr.bf16.mxu1 %v4361_v22  ;;  %3784 = vmatprep.subr.bf16.mxu0 %v4361_v22 }
 0x4ff   :  { %3773 = vmatpush3.bf16.msra.mxu1 %v4097_v52  ;;  %3785 = vmatpush3.bf16.msra.mxu0 %v4098_v53  ;;  %v4143_v52 = vld [vmem:[#allocation8 + $0x84] ss:$16 sps:$4 sm:$0xff]   ;;  %v4146_v53 = vld [vmem:[#allocation8 + $0x8c] ss:$16 sps:$4 sm:$0xff]  }
 0x500   :  { %3774 = vmatprep.subr.bf16.mxu1 %v4361_v22  ;;  %3786 = vmatprep.subr.bf16.mxu0 %v4361_v22 }
 0x503   :  { %3775 = vmatpush3.bf16.msra.mxu1 %v1997_v57  ;;  %3787 = vmatpush3.bf16.msra.mxu0 %v2064_v58  ;;  %v4141_v58 = vld [vmem:[#allocation8 + $0x80] ss:$16 sps:$4 sm:$0xff]  }
 0x504   :  { %3792 = vmatprep.subr.bf16.mxu1 %v4361_v22  ;;  %3804 = vmatprep.subr.bf16.mxu0 %v4361_v22 }
 0x506   :  { %3777 = vmatmul.mubr.msk.bf16.vlgmr.msra.gmra.mrb[32].mxu1 %vm1346_vm4, %v1971_v61  ;;  %3789 = vmatmul.mubr.msk.bf16.vlgmr.msra.gmra.mrb[44].mxu0 %vm1346_vm4, %v4695_v9  ;;  %v4113_v9 = vld [vmem:[#allocation7 + $0x128] sm:$0xff]   ;;  %v4152_v61 = vld [vmem:[#allocation8 + $0xac] ss:$16 sps:$4 sm:$0xff]  }
 0x507   :  { %3793 = vmatpush3.bf16.msra.mxu1 %v4101_v59  ;;  %3805 = vmatpush3.bf16.msra.mxu0 %v4102_v60  ;;  %v4144_v59 = vld [vmem:[#allocation8 + $0x88] ss:$16 sps:$4 sm:$0xff]   ;;  %v4149_v60 = vld [vmem:[#allocation8 + $0xa4] ss:$16 sps:$4 sm:$0xff]  }
 0x508   :  { %3794 = vmatprep.subr.bf16.mxu1 %v4361_v22  ;;  %3806 = vmatprep.subr.bf16.mxu0 %v4361_v22 }
 0x509   :  { %3800 = vmatprep.mubr.msk.bf16.mxu1 %vm4363_vm2, %v4361_v22  ;;  %3812 = vmatprep.mubr.msk.bf16.mxu0 %vm4363_vm2, %v4361_v22 }
 0x50b   :  { %3795 = vmatpush3.bf16.msra.mxu1 %v4103_v36  ;;  %3807 = vmatpush3.bf16.msra.mxu0 %v4104_v62  ;;  %v4147_v36 = vld [vmem:[#allocation8 + $0xa0] ss:$16 sps:$4 sm:$0xff]   ;;  %v4150_v62 = vld [vmem:[#allocation8 + $0xa8] ss:$16 sps:$4 sm:$0xff]  }
 0x50c   :  { %3796 = vmatprep.subr.bf16.mxu1 %v4361_v22  ;;  %3808 = vmatprep.subr.bf16.mxu0 %v4361_v22 }
 0x50f   :  { %3797 = vmatpush3.bf16.msra.mxu1 %v4105_v54  ;;  %3809 = vmatpush3.bf16.msra.mxu0 %v4106_v63  ;;  %v4155_v54 = vld [vmem:[#allocation8 + $0xc4] ss:$16 sps:$4 sm:$0xff]   ;;  %v4158_v63 = vld [vmem:[#allocation8 + $0xcc] ss:$16 sps:$4 sm:$0xff]  }
 0x510   :  { %3798 = vmatprep.subr.bf16.mxu1 %v4361_v22  ;;  %3810 = vmatprep.subr.bf16.mxu0 %v4361_v22 }
 0x513   :  { %3799 = vmatpush3.bf16.msra.mxu1 %v2132_v3  ;;  %3811 = vmatpush3.bf16.msra.mxu0 %v2199_v4  ;;  %v2418_v3 = vld [vmem:[#allocation8 + $0xe0] sm:$0xff]  ;;  %v2419_v4 = vld [vmem:[#allocation8 + $0xe8] sm:$0xff] }
 0x514   :  { %3816 = vmatprep.subr.bf16.mxu1 %v4361_v22  ;;  %3828 = vmatprep.subr.bf16.mxu0 %v4361_v22 }
 0x516   :  { %3801 = vmatmul.mubr.msk.bf16.vlgmr.msra.gmra.mrb[36].mxu1 %vm1346_vm4, %v2106_v7  ;;  %3813 = vmatmul.mubr.msk.bf16.vlgmr.msra.gmra.mrb[48].mxu0 %vm1346_vm4, %v4720_v25  ;;  %v4117_v25 = vld [vmem:[#allocation8] ss:$16 sps:$4 sm:$0xff]   ;;  %v3491_v7 = vcombine.low %v2418_v3, %v2418_v3 }
 0x517   :  { %3817 = vmatpush3.bf16.msra.mxu1 %v4109_v5  ;;  %3829 = vmatpush3.bf16.msra.mxu0 %v4110_v6  ;;  %v3492_v5 = vcombine.high %v2418_v3, %v2418_v3  ;;  %v3494_v6 = vcombine.high %v2419_v4, %v2419_v4 }
 0x518   :  { %3818 = vmatprep.subr.bf16.mxu1 %v4361_v22  ;;  %3830 = vmatprep.subr.bf16.mxu0 %v4361_v22 }
 0x519   :  { %3824 = vmatprep.mubr.msk.bf16.mxu1 %vm4363_vm2, %v4361_v22  ;;  %3836 = vmatprep.mubr.msk.bf16.mxu0 %vm4363_vm2, %v4361_v22 }
 0x51b   :  { %3819 = vmatpush3.bf16.msra.mxu1 %v4111_v8  ;;  %3831 = vmatpush3.bf16.msra.mxu0 %v4112_v10  ;;  %v3493_v8 = vcombine.low %v2419_v4, %v2419_v4  ;;  %v2598_v10 = vsel %vm1350_vm1, %v3491_v7, 0 }
 0x51c   :  { %3820 = vmatprep.subr.bf16.mxu1 %v4361_v22  ;;  %3832 = vmatprep.subr.bf16.mxu0 %v4361_v22 }
 0x51f   :  { %3821 = vmatpush3.bf16.msra.mxu1 %v4113_v9  ;;  %3833 = vmatpush3.bf16.msra.mxu0 %v4114_v11  ;;  %v2604_v9 = vsel %vm1350_vm1, %v3493_v8, 0  ;;  %v4169_v11 = vld [vmem:[#allocation10 + $0x40] sm:$0xff]  }
 0x520   :  { %3822 = vmatprep.subr.bf16.mxu1 %v4361_v22  ;;  %3834 = vmatprep.subr.bf16.mxu0 %v4361_v22 }
 0x523   :  { %3823 = vmatpush3.bf16.msra.mxu1 %v2267_v38  ;;  %3835 = vmatpush3.bf16.msra.mxu0 %v2334_v13 }
 0x524   :  { %2609 = vmatprep.subr.bf16.mxu1 %v4119_v26  ;;  %2650 = vmatprep.subr.bf16.mxu0 %v4122_v28 }
 0x526   :  { %3825 = vmatmul.mubr.msk.bf16.vlgmr.msra.gmra.mrb[40].mxu1 %vm1346_vm4, %v2241_v14  ;;  %3837 = vmatmul.mubr.msk.bf16.vlgmr.msra.gmra.mrb[52].mxu0 %vm1346_vm4, %v4736_v45  ;;  %v4134_v45 = vld [vmem:[#allocation8 + $0x4c] ss:$16 sps:$4 sm:$0xff]  }
 0x527   :  { %2641 = vmatprep.mubr.bf16.mxu1 %v4360_v0  ;;  %2682 = vmatprep.mubr.bf16.mxu0 %v4360_v0 }
 0x528   :  { %2610 = vmatpush1.bf16.msra.mxu1 %v4117_v25  ;;  %2651 = vmatpush1.bf16.msra.mxu0 %v4120_v27 }
 0x529   :  { %2611 = vmatprep.subr.bf16.mxu1 %v4125_v40  ;;  %2652 = vmatprep.subr.bf16.mxu0 %v4128_v41 }
 0x52c   :  { %2612 = vmatpush1.bf16.msra.mxu1 %v4123_v42  ;;  %2653 = vmatpush1.bf16.msra.mxu0 %v4126_v43 }
 0x52d   :  { %2613 = vmatprep.subr.bf16.mxu1 %v4131_v44  ;;  %2654 = vmatprep.subr.bf16.mxu0 %v4134_v45 }
 0x530   :  { %2614 = vmatpush1.bf16.msra.mxu1 %v4129_v46  ;;  %2655 = vmatpush1.bf16.msra.mxu0 %v4132_v47 }
 0x531   :  { %2615 = vmatprep.subr.bf16.mxu1 %v4137_v48  ;;  %2656 = vmatprep.subr.bf16.mxu0 %v4140_v33 }
 0x534   :  { %2616 = vmatpush1.bf16.msra.mxu1 %v4135_v49  ;;  %2657 = vmatpush1.bf16.msra.mxu0 %v4138_v50 }
 0x535   :  { %2617 = vmatprep.subr.bf16.mxu1 %v4143_v52  ;;  %2658 = vmatprep.subr.bf16.mxu0 %v4146_v53 }
 0x538   :  { %2618 = vmatpush1.bf16.msra.mxu1 %v4141_v58  ;;  %2659 = vmatpush1.bf16.msra.mxu0 %v4144_v59 }
 0x539   :  { %2619 = vmatprep.subr.bf16.mxu1 %v4149_v60  ;;  %2660 = vmatprep.subr.bf16.mxu0 %v4152_v61 }
 0x53c   :  { %2620 = vmatpush1.bf16.msra.mxu1 %v4147_v36  ;;  %2661 = vmatpush1.bf16.msra.mxu0 %v4150_v62 }
 0x53d   :  { %2621 = vmatprep.subr.bf16.mxu1 %v4155_v54  ;;  %2662 = vmatprep.subr.bf16.mxu0 %v4158_v63 }
 0x540   :  { %v4802_v15 = vpop.f32.mrb[20].mxu0  ;;  %2622 = vmatpush1.bf16.msra.mxu1 %v4153_v1  ;;  %2663 = vmatpush1.bf16.msra.mxu0 %v4156_v2 }
 0x541   :  { %v3682_v16 = vpop.f32.mrb[21].mxu0  ;;  %3495 = vmatprep.subr.msk.bf16.mxu1 %vm1350_vm1, %v3492_v5  ;;  %3497 = vmatprep.subr.msk.bf16.mxu0 %vm1350_vm1, %v3494_v6  ;;  %v3462_v6 = vld [vmem:[%s4927_s8] ss:$0 sm:$0xff] }
 0x542   :  { %v1391_v17 = vpop.f32.mrb[22].mxu0 }
 0x543   :  { %v3683_v18 = vpop.f32.mrb[23].mxu0 }
 0x544   :  { %2624 = vmatpush1.bf16.msra.mxu1 %v2598_v10  ;;  %2665 = vmatpush1.bf16.msra.mxu0 %v2604_v9  ;;  %v4163_v10 = vld [vmem:[#allocation10 + $0x80] sm:$0xff]  }
 0x545   :  { %2998 = vmatprep.subr.bf16.mxu0 %v4360_v0  ;;  %3624 = vmatprep.subr.bf16.mxu1 %v4169_v11  ;;  %v4170_v9 = vld [vmem:[#allocation10] sm:$0xff]  }
 0x550   :  { %v4804_v19 = vpop.f32.mrb[24].mxu0 }
 0x551   :  { %v3694_v20 = vpop.f32.mrb[25].mxu0 }
 0x552   :  { %v1475_v21 = vpop.f32.mrb[26].mxu0 }
 0x553   :  { %v3695_v23 = vpop.f32.mrb[27].mxu0 }
 0x560   :  { %v4806_v29 = vpop.f32.mrb[28].mxu0 }
 0x561   :  { %v3706_v37 = vpop.f32.mrb[29].mxu0 }
 0x562   :  { %v1561_v39 = vpop.f32.mrb[30].mxu0 }
 0x563   :  { %v3707_v30 = vpop.f32.mrb[31].mxu0 }
 0x570   :  { %v4808_v51 = vpop.f32.mrb[32].mxu0 }
 0x571   :  { %v3718_v55 = vpop.f32.mrb[33].mxu0 }
 0x572   :  { %v1645_v56 = vpop.f32.mrb[34].mxu0 }
 0x573   :  { %v3719_v57 = vpop.f32.mrb[35].mxu0 }
 0x5b9   :  { %v1728_v12 = vpop.f32.mrb[24].mxu1  ;;  %v1812_v24 = vpop.f32.mrb[36].mxu0 }
 0x5ba   :  { %v3730_v38 = vpop.f32.mrb[25].mxu1  ;;  %v3742_v13 = vpop.f32.mrb[37].mxu0 }
 0x5bb   :  { %v1731_v14 = vpop.f32.mrb[26].mxu1  ;;  %v1815_v16 = vpop.f32.mrb[38].mxu0  ;;  %v4173_v38 = vld [vmem:[#allocation10 + $0x8] sm:$0xff]   ;;  %v4175_v13 = vld [vmem:[#allocation10 + $0x50] sm:$0xff]  }
 0x5bc   :  { %v3731_v17 = vpop.f32.mrb[27].mxu1  ;;  %v3743_v18 = vpop.f32.mrb[39].mxu0  ;;  %v4165_v14 = vld [vmem:[#allocation10 + $0x90] sm:$0xff]  }
 0x5bd   :  { %v4176_v16 = vld [vmem:[#allocation10 + $0x10] sm:$0xff]   ;;  %v4178_v17 = vld [vmem:[#allocation10 + $0x58] sm:$0xff]  }
 0x5be   :  { %v4166_v18 = vld [vmem:[#allocation10 + $0x98] sm:$0xff]  }
 0x5c9   :  { %v1898_v20 = vpop.f32.mrb[28].mxu1  ;;  %v1965_v21 = vpop.f32.mrb[40].mxu0 }
 0x5ca   :  { %v1966_v23 = vadd.f32 %v1965_v21, %v4802_v15  ;;  %v3754_v25 = vpop.f32.mrb[29].mxu1  ;;  %v3766_v26 = vpop.f32.mrb[41].mxu0  ;;  %v4181_v21 = vld [vmem:[#allocation10 + $0x60] sm:$0xff]  }
 0x5cb   :  { %v1901_v27 = vpop.f32.mrb[30].mxu1  ;;  %v1968_v28 = vpop.f32.mrb[42].mxu0  ;;  %v4182_v25 = vld [vmem:[#allocation10 + $0x20] sm:$0xff]   ;;  %v4184_v26 = vld [vmem:[#allocation10 + $0x68] sm:$0xff]  }
 0x5cc   :  { %v3755_v37 = vpop.f32.mrb[31].mxu1  ;;  %v3767_v39 = vpop.f32.mrb[43].mxu0  ;;  %v4168_v27 = vld [vmem:[#allocation10 + $0xa8] sm:$0xff]  }
 0x5cd   :  { %v4185_v28 = vld [vmem:[#allocation10 + $0x28] sm:$0xff]   ;;  %v4171_v37 = vld [vmem:[#allocation10 + $0xb0] sm:$0xff]   ;;  %v4174_v39 = vld [vmem:[#allocation10 + $0xb8] sm:$0xff]  }
 0x5d9   :  { %v2033_v30 = vpop.f32.mrb[32].mxu1  ;;  %v2100_v40 = vpop.f32.mrb[44].mxu0 }
 0x5da   :  { %v2034_v41 = vadd.f32 %v2033_v30, %v4804_v19  ;;  %v2101_v42 = vadd.f32 %v2100_v40, %v4806_v29  ;;  %v3778_v43 = vpop.f32.mrb[33].mxu1  ;;  %v3790_v44 = vpop.f32.mrb[45].mxu0  ;;  %v4177_v30 = vld [vmem:[#allocation10 + $0xc0] sm:$0xff]   ;;  %v4180_v40 = vld [vmem:[#allocation10 + $0xc8] sm:$0xff]  }
 0x5db   :  { %v2036_v45 = vpop.f32.mrb[34].mxu1  ;;  %v2103_v46 = vpop.f32.mrb[46].mxu0  ;;  %v4187_v43 = vld [vmem:[#allocation10 + $0x70] sm:$0xff]  }
 0x5dc   :  { %v2376_v47 = vadd.f32 %v2034_v41, %v1966_v23  ;;  %v3779_v48 = vpop.f32.mrb[35].mxu1  ;;  %v3791_v49 = vpop.f32.mrb[47].mxu0  ;;  %v4167_v23 = vld [vmem:[#allocation10 + $0xa0] sm:$0xff]   ;;  %v4183_v41 = vld [vmem:[#allocation10 + $0xd0] sm:$0xff]   ;;  %v4190_v46 = vld [vmem:[#allocation10 + $0x78] sm:$0xff]  }
 0x5dd   :  { %v4188_v44 = vld [vmem:[#allocation10 + $0x30] sm:$0xff]   ;;  %v4189_v45 = vld [vmem:[#allocation10 + $0xe0] sm:$0xff]   ;;  %v4192_v48 = vld [vmem:[#allocation10 + $0xe8] sm:$0xff]  }
 0x5de   :  { %v2421_v49 = vld [vmem:[%s4929_s10] sm:$0xf] }
 0x5e9   :  { %v2168_v15 = vpop.f32.mrb[36].mxu1  ;;  %v2235_v50 = vpop.f32.mrb[48].mxu0 }
 0x5ea   :  { %v2169_v33 = vadd.f32 %v2168_v15, %v4808_v51  ;;  %v2236_v52 = vadd.f32 %v2235_v50, %v1728_v12  ;;  %v3802_v53 = vpop.f32.mrb[37].mxu1  ;;  %v3814_v55 = vpop.f32.mrb[49].mxu0  ;;  %v4172_v12 = vld [vmem:[#allocation10 + $0x48] sm:$0xff]   ;;  %v2426_v15 = vrot.slane %v2421_v49, %v4605_v31  ;;  %v2434_v50 = vrot.slane %v2421_v49, %v4608_v32 }
 0x5eb   :  { %v2171_v56 = vpop.f32.mrb[38].mxu1  ;;  %v2238_v57 = vpop.f32.mrb[50].mxu0 }
 0x5ec   :  { %v2377_v58 = vadd.f32 %v2169_v33, %v2101_v42  ;;  %v3803_v19 = vpop.f32.mrb[39].mxu1  ;;  %v3815_v59 = vpop.f32.mrb[51].mxu0  ;;  %v4186_v42 = vld [vmem:[#allocation10 + $0xd8] sm:$0xff]   ;;  %v2430_v33 = vrot.slane %v2421_v49, %v4614_v34 }
 0x5ee   :  { %v2379_v29 = vadd.f32 %v2377_v58, %v2376_v47  ;;  %v4191_v47 = vld [vmem:[#allocation10 + $0x38] sm:$0xff]  }
 0x5f9   :  { %v2303_v60 = vpop.f32.mrb[40].mxu1  ;;  %v2370_v61 = vpop.f32.mrb[52].mxu0 }
 0x5fa   :  { %v2304_v36 = vadd.f32 %v2303_v60, %v1812_v24  ;;  %v2371_v62 = vadd.f32 %v2370_v61, %v1898_v20  ;;  %v3826_v54 = vpop.f32.mrb[41].mxu1  ;;  %v3838_v63 = vpop.f32.mrb[53].mxu0  ;;  %v4164_v24 = vld [vmem:[#allocation10 + $0x88] sm:$0xff]   ;;  %v4179_v20 = vld [vmem:[#allocation10 + $0x18] sm:$0xff]  }
 0x5fb   :  { %v2306_v1 = vpop.f32.mrb[42].mxu1  ;;  %v2373_v2 = vpop.f32.mrb[54].mxu0 }
 0x5fc   :  { %v2378_v3 = vadd.f32 %v2304_v36, %v2236_v52  ;;  %v3827_v4 = vpop.f32.mrb[43].mxu1  ;;  %v3839_v51 = vpop.f32.mrb[55].mxu0  ;;  %v2438_v52 = vrot.slane %v2421_v49, %v4617_v35 }
 0x5fd   :  { %v4193_v4 = vld [vmem:[%s4932_s13] sm:$0xff]  }
 0x5fe   :  { %v2380_v5 = vadd.f32 %v2378_v3, %v2371_v62 }
 0x600   :  { %v2381_v7 = vadd.f32 %v2380_v5, %v2379_v29 }
 0x602   :  { %v2389_v8 = vadd.f32 %v3462_v6, %v2381_v7  ;;  %v4194_v6 = vld [vmem:[%s4932_s13 + $0x8] sm:$0xff]   ;;  %v4195_v7 = vld [vmem:[%s4932_s13 + $0x10] sm:$0xff]  }
 0x604   :  { %v2420_v11 = vpack.c.bf16 %v2389_v8, %v2389_v8  ;;  %v4196_v8 = vld [vmem:[%s4932_s13 + $0x18] sm:$0xff]  }
 0x606   :  { %3496 = vmatmul.mubr.msk.bf16.vlgmr.msra.gmra.mrb[44].mxu1 %vm2593_vm5, %v2420_v11  ;;  %3498 = vmatmul.mubr.msk.bf16.vlgmr.msra.gmra.mrb[56].mxu0 %vm2593_vm5, %v2420_v11  ;;  %v4199_v11 = vld [vmem:[%s4932_s13 + $0x30] sm:$0xff]  }
 0x607   :  { %2999 = vmatpush1.bf16.msra.mxu0 %v4163_v10  ;;  %3625 = vmatpush3.bf16.msra.mxu1 %v4170_v9  ;;  %v4197_v10 = vld [vmem:[%s4932_s13 + $0x20] sm:$0xff]   ;;  %v4198_v9 = vld [vmem:[%s4932_s13 + $0x28] sm:$0xff]  }
 0x608   :  { %3000 = vmatprep.subr.bf16.mxu0 %v4360_v0  ;;  %3626 = vmatprep.subr.bf16.mxu1 %v4172_v12  ;;  %v4200_v12 = vld [vmem:[%s4932_s13 + $0x38] ss:$0 sps:$4 sm:$0xff]  }
 0x60b   :  { %3001 = vmatpush1.bf16.msra.mxu0 %v4164_v24  ;;  %3627 = vmatpush3.bf16.msra.mxu1 %v4173_v38  ;;  %v3113_v24 = vsel %vm1350_vm1, %v4200_v12, 0 }
 0x60c   :  { %3002 = vmatprep.subr.bf16.mxu0 %v4360_v0  ;;  %3628 = vmatprep.subr.bf16.mxu1 %v4175_v13 }
 0x60f   :  { %3003 = vmatpush1.bf16.msra.mxu0 %v4165_v14  ;;  %3629 = vmatpush3.bf16.msra.mxu1 %v4176_v16  ;;  %v3499_v14 = vld [vmem:[%s4931_s12] ss:$0 sm:$0xff] }
 0x610   :  { %3004 = vmatprep.subr.bf16.mxu0 %v4360_v0  ;;  %3630 = vmatprep.subr.bf16.mxu1 %v4178_v17 }
 0x613   :  { %3005 = vmatpush1.bf16.msra.mxu0 %v4166_v18  ;;  %3631 = vmatpush3.bf16.msra.mxu1 %v4179_v20 }
 0x614   :  { %3006 = vmatprep.subr.bf16.mxu0 %v4360_v0  ;;  %3632 = vmatprep.subr.bf16.mxu1 %v4181_v21 }
 0x617   :  { %3007 = vmatpush1.bf16.msra.mxu0 %v4167_v23  ;;  %3633 = vmatpush3.bf16.msra.mxu1 %v4182_v25 }
 0x618   :  { %3008 = vmatprep.subr.bf16.mxu0 %v4360_v0  ;;  %3634 = vmatprep.subr.bf16.mxu1 %v4184_v26 }
 0x61b   :  { %3009 = vmatpush1.bf16.msra.mxu0 %v4168_v27  ;;  %3635 = vmatpush3.bf16.msra.mxu1 %v4185_v28 }
 0x61c   :  { %3010 = vmatprep.subr.bf16.mxu0 %v4360_v0  ;;  %3636 = vmatprep.subr.bf16.mxu1 %v4187_v43 }
 0x61f   :  { %3011 = vmatpush1.bf16.msra.mxu0 %v4171_v37  ;;  %3637 = vmatpush3.bf16.msra.mxu1 %v4188_v44  ;;  %v3531_v44 = vld [vmem:[%s4933_s14] ss:$0 sm:$0xff]  ;;  %s4365_s14 = smov [#allocation11]  }
 0x620   :  { %3012 = vmatprep.subr.bf16.mxu0 %v4360_v0  ;;  %3638 = vmatprep.subr.bf16.mxu1 %v4190_v46  ;;  %s3259_s7 = sshll.u32 %s4365_s14, 4  ;;  %s3260_s7 = int_to_ptr.vmem [resolvable:$true] %s3259_s7 }
 0x621   :  { %s4319_s19 = scalar_lea.vmem %s3260_s7, 32  ;;  %p4324_p13 = scmp.lt.s32.totalorder %s3260_s7, %s3260_s7 }
 0x622   :  { %p4320_p12 = scmp.ne.s32.totalorder %s3260_s7, %s4319_s19  ;;  %p4325_p0 = scmp.lt.s32.totalorder %s4319_s19, %s4319_s19 }
 0x623   :  { %3013 = vmatpush1.bf16.msra.mxu0 %v4174_v39  ;;  %3639 = vmatpush3.bf16.msra.mxu1 %v4191_v47  ;;  %v4201_v39 = vld [vmem:[%s4934_s15] sm:$0xff]  }
 0x624   :  { %3014 = vmatprep.subr.bf16.mxu0 %v4360_v0  ;;  %3840 = vmatprep.subr.bf16.mxu1 %v4361_v22  ;;  %p4326_p1 = por %p4325_p0, %p4324_p13 }
 0x626   :  { %p4327_p2 = pnand %p4326_p1, %p4320_p12 }
 0x627   :  { %3015 = vmatpush1.bf16.msra.mxu0 %v4177_v30 }
 0x628   :  { %3016 = vmatprep.subr.bf16.mxu0 %v4360_v0 }
 0x62b   :  { %3017 = vmatpush1.bf16.msra.mxu0 %v4180_v40  ;;  %v4202_v40 = vld [vmem:[%s4934_s15 + $0x8] sm:$0xff]  }
 0x62c   :  { %3018 = vmatprep.subr.bf16.mxu0 %v4360_v0 }
 0x62f   :  { %3019 = vmatpush1.bf16.msra.mxu0 %v4183_v41  ;;  %v4203_v41 = vld [vmem:[%s4934_s15 + $0x10] sm:$0xff]  }
 0x630   :  { %3020 = vmatprep.subr.bf16.mxu0 %v4360_v0 }
 0x633   :  { %3021 = vmatpush1.bf16.msra.mxu0 %v4186_v42  ;;  %v4204_v42 = vld [vmem:[%s4934_s15 + $0x18] sm:$0x3f]  }
 0x634   :  { %3022 = vmatprep.subr.bf16.mxu0 %v4360_v0  ;;  %v3203_v43 = vsel %vm3201_vm12, %v4204_v42, 0 }
 0x637   :  { %3023 = vmatpush1.bf16.msra.mxu0 %v4189_v45 }
 0x638   :  { %3024 = vmatprep.subr.bf16.mxu0 %v4360_v0 }
 0x63b   :  { %3025 = vmatpush1.bf16.msra.mxu0 %v4192_v48 }
 0x6d9   :  { %v2643_v0 = vpop.f32.mrb[44].mxu1  ;;  %v2684_v53 = vpop.f32.mrb[56].mxu0 }
 0x6da   :  { %v2644_v55 = vadd.f32 %v2643_v0, %v2426_v15  ;;  %v2685_v56 = vadd.f32 %v2684_v53, %v2434_v50  ;;  %v2645_v57 = vpop.f32.mrb[45].mxu1  ;;  %v2686_v58 = vpop.f32.mrb[57].mxu0 }
 0x6db   :  { %v2646_v19 = vadd.f32 %v2645_v57, %v2430_v33  ;;  %v2687_v59 = vadd.f32 %v2686_v58, %v2438_v52  ;;  %v2647_v29 = vpop.f32.mrb[46].mxu1  ;;  %v2688_v60 = vpop.f32.mrb[58].mxu0  ;;  %v3541_v33 = vld [vmem:[%s4935_s16] ss:$0 sm:$0xff] }
 0x6dc   :  { %vm2691_vm6 = vcmp.ge.f32.partialorder %v2644_v55, 0.0  ;;  %v2695_v61 = vmul.f32 0.01, %v2644_v55  ;;  %vm2693_vm7 = vcmp.ge.f32.partialorder %v2685_v56, 0.0  ;;  %v2697_v31 = vmul.f32 0.01, %v2685_v56 }
 0x6dd   :  { %vm2692_vm8 = vcmp.ge.f32.partialorder %v2646_v19, 0.0  ;;  %v2696_v32 = vmul.f32 0.01, %v2646_v19  ;;  %vm2694_vm9 = vcmp.ge.f32.partialorder %v2687_v59, 0.0  ;;  %v2698_v34 = vmul.f32 0.01, %v2687_v59 }
 0x6de   :  { %v2699_v36 = vsel %vm2691_vm6, %v2644_v55, %v2695_v61  ;;  %v2701_v35 = vsel %vm2693_vm7, %v2685_v56, %v2697_v31  ;;  %v2648_v62 = vpop.f32.mrb[47].mxu1  ;;  %v2689_v54 = vpop.f32.mrb[59].mxu0 }
 0x6df   :  { %v2702_v63 = vsel %vm2694_vm9, %v2687_v59, %v2698_v34  ;;  %v2700_v1 = vsel %vm2692_vm8, %v2646_v19, %v2696_v32  ;;  %v2763_v51 = vpack.c.bf16 %v2699_v36, %v2699_v36  ;;  %v2765_v5 = vpack.c.bf16 %v2701_v35, %v2701_v35 }
 0x6e0   :  { %v2766_v2 = vpack.c.bf16 %v2702_v63, %v2702_v63  ;;  %v2764_v3 = vpack.c.bf16 %v2700_v1, %v2700_v1 }
 0x6e2   :  { %2990 = vmatprep.mubr.bf16.mxu1 %v2764_v3  ;;  %3530 = vmatprep.mubr.msk.bf16.mxu0 %vm2954_vm10, %v2766_v2 }
 0x6e3   :  { %2991 = vmatmul.mubr.bf16.vlgmr.msra.gmra.mrb[48].mxu1 %v2763_v51  ;;  %3031 = vmatmul.mubr.bf16.vlgmr.msra.gmra.mrb[60].mxu0 %v2765_v5 }
 0x6e4   :  { %3841 = vmatpush3.bf16.msra.mxu1 %v4193_v4  ;;  %3856 = vmatprep.mubr.msk.bf16.mxu1 %vm4363_vm2, %v4361_v22 }
 0x6e5   :  { %3842 = vmatprep.subr.bf16.mxu1 %v4361_v22 }
 0x6e8   :  { %3843 = vmatpush3.bf16.msra.mxu1 %v4194_v6 }
 0x6e9   :  { %3844 = vmatprep.subr.bf16.mxu1 %v4361_v22 }
 0x6ec   :  { %3845 = vmatpush3.bf16.msra.mxu1 %v4195_v7 }
 0x6ed   :  { %3846 = vmatprep.subr.bf16.mxu1 %v4361_v22 }
 0x6f0   :  { %3847 = vmatpush3.bf16.msra.mxu1 %v4196_v8 }
 0x6f1   :  { %3848 = vmatprep.subr.bf16.mxu1 %v4361_v22 }
 0x6f4   :  { %3849 = vmatpush3.bf16.msra.mxu1 %v4197_v10 }
 0x6f5   :  { %3850 = vmatprep.subr.bf16.mxu1 %v4361_v22 }
 0x6f8   :  { %3851 = vmatpush3.bf16.msra.mxu1 %v4198_v9 }
 0x6f9   :  { %3852 = vmatprep.subr.bf16.mxu1 %v4361_v22 }
 0x6fc   :  { %3853 = vmatpush3.bf16.msra.mxu1 %v4199_v11 }
 0x6fd   :  { %3854 = vmatprep.subr.bf16.mxu1 %v4361_v22 }
 0x700   :  { %3855 = vmatpush3.bf16.msra.mxu1 %v3113_v24 }
 0x701   :  { %3860 = vmatprep.subr.bf16.mxu1 %v4361_v22 }
 0x7b6   :  { %v3640_v38 = vpop.f32.mrb[48].mxu1  ;;  %v3032_v13 = vpop.f32.mrb[60].mxu0 }
 0x7b7   :  { %v3641_v16 = vpop.f32.mrb[49].mxu1  ;;  %v3034_v17 = vpop.f32.mrb[61].mxu0 }
 0x7b8   :  { %v3642_v18 = vadd.f32 %v3641_v16, %v3640_v38  ;;  %v3643_v20 = vpop.f32.mrb[50].mxu1  ;;  %v3035_v21 = vpop.f32.mrb[62].mxu0 }
 0x7b9   :  { %v3644_v23 = vpop.f32.mrb[51].mxu1  ;;  %v3036_v25 = vpop.f32.mrb[63].mxu0 }
 0x7ba   :  { %v2993_v26 = vadd.f32 %v3642_v18, %v3499_v14 }
 0x7bc   :  { %v3033_v27 = vadd.f32 %v3032_v13, %v2993_v26 }
 0x7be   :  { %vm3038_vm11 = vcmp.ge.f32.partialorder %v3033_v27, 0.0  ;;  %v3039_v28 = vmul.f32 0.01, %v3033_v27 }
 0x7c0   :  { %v3040_v37 = vsel %vm3038_vm11, %v3033_v27, %v3039_v28 }
 0x7c1   :  { %v3056_v30 = vpack.c.bf16 %v3040_v37, %v3040_v37 }
 0x7c3   :  { %3857 = vmatmul.mubr.msk.bf16.vlgmr.msra.gmra.mrb[52].mxu1 %vm2593_vm5, %v3056_v30 }
 0x7c4   :  { %3861 = vmatpush3.bf16.msra.mxu1 %v4201_v39  ;;  %3868 = vmatprep.mubr.msk.bf16.mxu1 %vm4363_vm2, %v4361_v22 }
 0x7c5   :  { %3862 = vmatprep.subr.bf16.mxu1 %v4361_v22 }
 0x7c8   :  { %3863 = vmatpush3.bf16.msra.mxu1 %v4202_v40 }
 0x7c9   :  { %3864 = vmatprep.subr.bf16.mxu1 %v4361_v22 }
 0x7cc   :  { %3865 = vmatpush3.bf16.msra.mxu1 %v4203_v41 }
 0x7cd   :  { %3866 = vmatprep.subr.bf16.mxu1 %v4361_v22 }
 0x7d0   :  { %3867 = vmatpush3.bf16.msra.mxu1 %v3203_v43 }
 0x896   :  { %v3149_v45 = vpop.f32.mrb[52].mxu1 }
 0x897   :  { %v3150_v46 = vadd.f32 %v3531_v44, %v3149_v45  ;;  %v3858_v47 = vpop.f32.mrb[53].mxu1 }
 0x898   :  { %v3152_v48 = vpop.f32.mrb[54].mxu1 }
 0x899   :  { %vm3155_vm13 = vcmp.ge.f32.partialorder %v3150_v46, 0.0  ;;  %v3156_v49 = vmul.f32 0.01, %v3150_v46  ;;  %v3859_v15 = vpop.f32.mrb[55].mxu1 }
 0x89b   :  { %v3157_v50 = vsel %vm3155_vm13, %v3150_v46, %v3156_v49 }
 0x89c   :  { %v3166_v22 = vpack.c.bf16 %v3157_v50, %v3157_v50 }
 0x89e   :  { %3869 = vmatmul.mubr.msk.bf16.vlgmr.msra.gmra.mrb[56].mxu1 %vm3197_vm14, %v3166_v22 }
 0x971   :  { %v3239_v52 = vpop.f32.mrb[56].mxu1 }
 0x972   :  { %v3240_v0 = vadd.f32 %v3541_v33, %v3239_v52  ;;  %v3870_v53 = vpop.f32.mrb[57].mxu1 }
 0x973   :  { %v3242_v55 = vpop.f32.mrb[58].mxu1 }
 0x974   :  { %v3547_v56 = vmul.f32 -1.442695, %v3240_v0  ;;  %v3871_v57 = vpop.f32.mrb[59].mxu1 }
 0x976   :  { %4205 = vpow2.f32 %v3547_v56 }
 0x980   :  { %v4206_v58 = vpop.eup %4205 }
 0x981   :  { %v3248_v19 = vadd.f32 1.0, %v4206_v58 }
 0x983   :  { %4207 = vrcp.f32 %v3248_v19 }
 0x98d   :  { %v4208_v59 = vpop.eup %4207 }
 0x98e   :  { %3252 = vst.msk [vmem:[#allocation11] sm:$0x3] %vm3251_vm15, %v4208_v59 }
 0x98f   :  { %4330 = shalt.err (!%p4327_p2)
}
 0x990   :  { %s4945_s17 = sld [smem:[#allocation18_spill]] }
 0x996   :  { %s4331_s28 = scalar_lea.hbm %s4945_s17, 32 }
 0x997   :  { %p4332_p3 = scmp.ne.s32.totalorder %s4945_s17, %s4331_s28  ;;  %p4335_p4 = scmp.lt.u32.totalorder %s4331_s28, %s4945_s17 }
 0x999   :  { %p4337_p5 = pnand %p4335_p4, %p4332_p3 }
 0x99b   :  { %4340 = shalt.err (!%p4337_p5)
}
 0x99c   :  { %3262 = dma.vmem_to_hbm [thread:$0]  %s3260_s7, 32, %s4945_s17, [#allocation4]  }
 0x99d   :  { %4347 = dma.done.wait [#allocation4], 32  }
 0x99e   :  { %4348 = vsyncadd [#allocation4], 4294967264 }
 0x99f   :  { %3266 = vsyncpa [#allocation3], 1 }
 0x9a0   :  { %3267 = vsyncpa [#allocation6], 1 }
 0x9a1   :  { %3268 = vsyncpa [#allocation9], 1 }
 0x9a2   :  { %3269 = vsyncpa [#allocation4], 1 }

</bundles_post_ra>
